<compile_context>
chip_gen: v5e
topology: v5e:2x2
jax: 0.10.0
libtpu: 0.0.40
codegen_flags: <defaults>
</compile_context>

<pallas_src>
import functools
import math

import jax
import jax.numpy as jnp
from jax.experimental import pallas as pl
from jax.experimental.pallas import tpu as pltpu


# ----------------------------------------------------------------------------
# Fused, batched Pallas kernel: one grid step == one graph, fully in VMEM.
# ----------------------------------------------------------------------------

def _san_fused_kernel(zc_ref, incl_ref, incr_ref, ward_ref, attp_ref, atty_ref,
                      out_ref, *, n0, n1, n2, fout, alpha):
    f32 = jnp.float32
    F = fout

    def mm(a, b):
        return jnp.dot(a, b, preferred_element_type=f32)

    # --- unpack the packed operands (static slices of loaded slabs) ---------
    ZC = zc_ref[...]                          # (Sz, Fin) = [z0 ; z1 ; z2]
    INCL = incl_ref[...]                      # (n0+n2, n1) = [B1 ; B2^T]
    INCR = incr_ref[...]                      # (n1, n0+n2) = [B1^T | B2]
    z0 = ZC[0:n0, :]
    z1 = ZC[n0:n0 + n1, :]
    z2 = ZC[n0 + n1:n0 + n1 + n2, :]
    B1 = INCL[0:n0, :]                        # (n0, n1)
    B2t = INCL[n0:n0 + n2, :]                 # (n2, n1)
    B1t = INCR[:, 0:n0]                       # (n1, n0)
    B2 = INCR[:, n0:n0 + n2]                  # (n1, n2)
    WARD = ward_ref[...]                      # (Fin, 4F) = [W | A | R | D]
    ATTP = attp_ref[...]                      # (4F, 14) block-diag logit weights
    ATTY = atty_ref[...]                      # (F, 10)  logit weights on y12/y22

    # --- Hodge Laplacians -> hoisted nonzero masks (f32, exact) -------------
    m0 = mm(B1, B1t) != 0                     # (n0, n0)
    m1d = mm(B1t, B1) != 0                    # (n1, n1)
    m1u = mm(B2, B2t) != 0                    # (n1, n1)
    m2 = mm(B2t, B2) != 0                     # (n2, n2)

    # --- widened feature projections X @ [W|A|R|D] ---------------------------
    z0P = mm(z0, WARD)                        # (n0, 4F)
    z1P = mm(z1, WARD)                        # (n1, 4F)
    z2P = mm(z2, WARD)                        # (n2, 4F)
    z0W, z0A = z0P[:, 0:F], z0P[:, F:2 * F]
    z1W, z1A = z1P[:, 0:F], z1P[:, F:2 * F]
    z1R, z1D = z1P[:, 2 * F:3 * F], z1P[:, 3 * F:4 * F]
    z2R = z2P[:, 2 * F:3 * F]

    # --- shared incidence pre-products (attention features + update terms) --
    y12 = mm(B1t, z0A)                        # (n1, F) = (B1^T @ z0) @ A
    y22 = mm(B2t, z1D)                        # (n2, F) = (B2^T @ z1) @ D
    y02 = mm(B1, z1A)                         # (n0, F) = B1 @ (z1 @ A)

    # --- fused per-level attention logits (block-diagonal weights) ----------
    lg0 = mm(z0P, ATTP[:, 0:4])                              # heads l0_1, l0_2
    lg1 = mm(z1P, ATTP[:, 4:10]) + mm(y12, ATTY[:, 0:6])     # l1_1, l1_2, l1_3
    lg2 = mm(z2P, ATTP[:, 10:14]) + mm(y22, ATTY[:, 6:10])   # l2_1, l2_2

    def head(lg, c, mask):
        e = lg[:, c:c + 1] + lg[:, c + 1:c + 2].T            # e1_i + e2_j
        e = jnp.where(e > 0, e, alpha * e)                   # LeakyReLU
        e = jnp.where(mask, e, f32(-9.0e15))
        mx = jnp.max(e, axis=1, keepdims=True)
        p = jnp.exp(e - mx)
        s = jnp.sum(p, axis=1, keepdims=True)
        # dropout on the attention matrix is identity in eval mode.
        return p * pl.reciprocal(s, approx=True)

    l0_1 = head(lg0, 0, m0)
    l0_2 = head(lg0, 2, m0)
    l1_1 = head(lg1, 0, m1d)
    l1_2 = head(lg1, 2, m1d)
    l1_3 = head(lg1, 4, m1u)
    # l1_4 only feeds the reference's dead fourth_term -> skipped.
    l2_1 = head(lg2, 0, m2)
    l2_2 = head(lg2, 2, m2)

    # --- fused sigmoid updates into one packed output slab ------------------
    out_ref[0:n0, :] = jax.nn.sigmoid(mm(l0_1, z0W) + mm(l0_2, y02))
    out_ref[n0:n0 + n1, :] = jax.nn.sigmoid(
        mm(l1_1, z1W) + mm(l1_2, y12) + mm(l1_3, z1R))
    out_ref[n0 + n1:n0 + n1 + n2, :] = jax.nn.sigmoid(
        mm(l2_1, z2R) + mm(l2_2, y22))


# ----------------------------------------------------------------------------
# pallas_call wrapper (batched, one grid step per graph)
# ----------------------------------------------------------------------------

@functools.partial(jax.jit, static_argnames=("n0", "n1", "n2", "alpha"))
def _san_pallas(zc, incl, incr, ward, attp, atty, *, n0, n1, n2, alpha):
    G, Sz, Fin = zc.shape
    F = ward.shape[1] // 4
    kernel = functools.partial(_san_fused_kernel, n0=n0, n1=n1, n2=n2,
                               fout=F, alpha=alpha)
    return pl.pallas_call(
        kernel,
        out_shape=jax.ShapeDtypeStruct((G, Sz, F), jnp.float32),
        grid=(G,),
        in_specs=[
            pl.BlockSpec((None, Sz, Fin), lambda g: (g, 0, 0)),      # zc
            pl.BlockSpec((None, n0 + n2, n1), lambda g: (g, 0, 0)),  # [B1;B2^T]
            pl.BlockSpec((None, n1, n0 + n2), lambda g: (g, 0, 0)),  # [B1^T|B2]
            pl.BlockSpec((Fin, 4 * F), lambda g: (0, 0)),            # WARD
            pl.BlockSpec((4 * F, 14), lambda g: (0, 0)),             # ATTP
            pl.BlockSpec((F, 10), lambda g: (0, 0)),                 # ATTY
        ],
        out_specs=pl.BlockSpec((None, Sz, F), lambda g: (g, 0, 0)),
        compiler_params=pltpu.CompilerParams(
            dimension_semantics=("parallel",),
            vmem_limit_bytes=32 * 1024 * 1024),
    )(zc, incl, incr, ward, attp, atty)


# ----------------------------------------------------------------------------
# Host-side glue: densify, pad, pack
# ----------------------------------------------------------------------------

def _densify(coo, shape):
    # COO -> dense incidence (XLA scatter; no clean Pallas TPU scatter).
    idx, val = coo
    return jnp.zeros(shape, jnp.float32).at[idx[0], idx[1]].add(
        val.astype(jnp.float32))


def _round8(n):
    return max(8, ((int(n) + 7) // 8) * 8)


def _pad_rows(x, n):
    return jnp.pad(x.astype(jnp.float32), ((0, n - x.shape[0]), (0, 0)))


def _pack_params(params, out_size, k):
    f32 = jnp.float32
    F = out_size * k
    WARD = jnp.concatenate([params["W"][0], params["A"][0],
                            params["R"][0], params["D"][0]],
                           axis=1).astype(f32)               # (in, 4F)

    def halves(name):
        a = params[name].astype(f32)[:, 0]                   # (2F,)
        return a[:F], a[F:]

    # Block-diagonal logit weights.
    #   level 0: lg0 = z0P @ ATTP[:, 0:4]                (heads l0_1, l0_2)
    #   level 1: lg1 = z1P @ ATTP[:, 4:10] + y12 @ ATTY[:, 0:6]
    #   level 2: lg2 = z2P @ ATTP[:,10:14] + y22 @ ATTY[:, 6:10]
    ATTP = jnp.zeros((4 * F, 14), f32)
    ATTY = jnp.zeros((F, 10), f32)
    a, b = halves("att_l0_1"); ATTP = ATTP.at[0:F, 0].set(a).at[0:F, 1].set(b)
    a, b = halves("att_l0_2"); ATTP = ATTP.at[F:2 * F, 2].set(a).at[F:2 * F, 3].set(b)
    a, b = halves("att_l1_1"); ATTP = ATTP.at[0:F, 4].set(a).at[0:F, 5].set(b)
    a, b = halves("att_l1_3"); ATTP = ATTP.at[2 * F:3 * F, 8].set(a).at[2 * F:3 * F, 9].set(b)
    a, b = halves("att_l2_1"); ATTP = ATTP.at[2 * F:3 * F, 10].set(a).at[2 * F:3 * F, 11].set(b)
    a, b = halves("att_l1_2"); ATTY = ATTY.at[:, 2].set(a).at[:, 3].set(b)
    a, b = halves("att_l2_2"); ATTY = ATTY.at[:, 8].set(a).at[:, 9].set(b)
    return WARD, ATTP, ATTY


def san_forward_many(params, graphs, *, k=1, alpha_leaky_relu=0.2):
    """graphs: list of (z0, z1, z2, b1, b2); b1/b2 are COO (indices, values)."""
    assert k == 1  # TODO(synk): k > 1 needs matrix_power accumulation chains.
    out_size = params["W"].shape[2]
    sizes = [(g[0].shape[0], g[1].shape[0], g[2].shape[0]) for g in graphs]
    n0 = _round8(max(s[0] for s in sizes))
    n1 = _round8(max(s[1] for s in sizes))
    n2 = _round8(max(s[2] for s in sizes))

    zcs, incls, incrs = [], [], []
    for (z0, z1, z2, b1, b2), (s0, s1, s2) in zip(graphs, sizes):
        B1 = jnp.pad(_densify(b1, (s0, s1)), ((0, n0 - s0), (0, n1 - s1)))
        B2 = jnp.pad(_densify(b2, (s1, s2)), ((0, n1 - s1), (0, n2 - s2)))
        zcs.append(jnp.concatenate(
            [_pad_rows(z0, n0), _pad_rows(z1, n1), _pad_rows(z2, n2)], axis=0))
        incls.append(jnp.concatenate([B1, B2.T], axis=0))    # (n0+n2, n1)
        incrs.append(jnp.concatenate([B1.T, B2], axis=1))    # (n1, n0+n2)

    WARD, ATTP, ATTY = _pack_params(params, out_size, k)
    out = _san_pallas(jnp.stack(zcs), jnp.stack(incls), jnp.stack(incrs),
                      WARD, ATTP, ATTY,
                      n0=n0, n1=n1, n2=n2, alpha=float(alpha_leaky_relu))

    results = []
    for g, (s0, s1, s2) in enumerate(sizes):
        results.append((out[g, 0:s0],
                        out[g, n0:n0 + s1],
                        out[g, n0 + n1:n0 + n1 + s2]))
    return results


def san_forward(params, z0, z1, z2, b1, b2, *, k=1, alpha_leaky_relu=0.2):
    """Single-graph forward matching the PyTorch module interface."""
    return san_forward_many(params, [(z0, z1, z2, b1, b2)], k=k,
                            alpha_leaky_relu=alpha_leaky_relu)[0]


# ----------------------------------------------------------------------------
# Pure-JAX reference (eval-mode semantics) for the sanity check
# ----------------------------------------------------------------------------

def _hdot(a, b):
    return jnp.dot(a, b, precision=jax.lax.Precision.HIGHEST)


def san_reference(params, z0, z1, z2, b1, b2, *, k=1, alpha=0.2):
    assert k == 1
    n_nodes, n_edges, n_tri = z0.shape[0], z1.shape[0], z2.shape[0]
    B1 = _densify(b1, (n_nodes, n_edges))
    B2 = _densify(b2, (n_edges, n_tri))
    W0, A0 = params["W"][0], params["A"][0]
    R0, D0 = params["R"][0], params["D"][0]
    F = W0.shape[1]
    l0 = _hdot(B1, B1.T); l1d = _hdot(B1.T, B1)
    l1u = _hdot(B2, B2.T); l2 = _hdot(B2.T, B2)

    def att(X, M, a, lap):
        Xf = _hdot(X, M)
        e = _hdot(Xf, a[:F]) + _hdot(Xf, a[F:]).T
        e = jnp.where(e > 0, e, alpha * e)
        e = jnp.where(lap != 0, e, -9.0e15)
        return jax.nn.softmax(e, axis=1)

    l0_1 = att(z0, W0, params["att_l0_1"], l0)
    l0_2 = att(z0, A0, params["att_l0_2"], l0)
    l1_1 = att(z1, W0, params["att_l1_1"], l1d)
    l1_2 = att(_hdot(B1.T, z0), A0, params["att_l1_2"], l1d)
    l1_3 = att(z1, R0, params["att_l1_3"], l1u)
    l2_1 = att(z2, R0, params["att_l2_1"], l2)
    l2_2 = att(_hdot(B2.T, z1), D0, params["att_l2_2"], l2)

    z0p = jax.nn.sigmoid(_hdot(_hdot(l0_1, z0), W0)
                         + _hdot(_hdot(_hdot(l0_2, B1), z1), A0))
    z1p = jax.nn.sigmoid(_hdot(_hdot(l1_1, z1), W0)
                         + _hdot(_hdot(_hdot(l1_2, B1.T), z0), A0)
                         + _hdot(_hdot(l1_3, z1), R0))
    z2p = jax.nn.sigmoid(_hdot(_hdot(l2_1, z2), R0)
                         + _hdot(_hdot(_hdot(l2_2, B2.T), z1), D0))
    return z0p, z1p, z2p


# ----------------------------------------------------------------------------
# Parameter init (Xavier-uniform like torch.nn.init.xavier_uniform_)
# ----------------------------------------------------------------------------

def _xavier_uniform(key, shape):
    if len(shape) == 2:
        fan_in, fan_out = shape[1], shape[0]
    else:  # (k, in, out) like torch's fan computation on a 3-D tensor
        rec = int(math.prod(shape[2:]))
        fan_in, fan_out = shape[1] * rec, shape[0] * rec
    bound = math.sqrt(6.0 / (fan_in + fan_out))
    return jax.random.uniform(key, shape, jnp.float32, -bound, bound)


def init_san_params(key, in_size, out_size, k=1):
    names = ["W", "A", "R", "D",
             "att_l0_1", "att_l0_2",
             "att_l1_1", "att_l1_2", "att_l1_3", "att_l1_4",
             "att_l2_1", "att_l2_2"]
    keys = jax.random.split(key, len(names))
    params = {}
    for n, kk in zip(names[:4], keys[:4]):
        params[n] = _xavier_uniform(kk, (k, in_size, out_size))
    for n, kk in zip(names[4:], keys[4:]):
        params[n] = _xavier_uniform(kk, (2 * out_size * k, 1))
    return params


# ----------------------------------------------------------------------------
# Demo
# ----------------------------------------------------------------------------

if __name__ == "__main__":
    key = jax.random.PRNGKey(0)
    in_size, out_size, k = 8, 16, 1
    n_nodes, n_edges, n_tri = 16, 32, 8          # multiples of 8 -> no padding
    n_graphs = 4                                  # one batched pallas_call

    params = init_san_params(jax.random.fold_in(key, 0), in_size, out_size, k)

    graphs = []
    for g in range(n_graphs):
        kz0, kz1, kz2, ki1, kj1, kv1, ki2, kj2, kv2 = jax.random.split(
            jax.random.fold_in(key, g + 1), 9)
        z0 = jax.random.normal(kz0, (n_nodes, in_size), jnp.float32)
        z1 = jax.random.normal(kz1, (n_edges, in_size), jnp.float32)
        z2 = jax.random.normal(kz2, (n_tri, in_size), jnp.float32)
        nnz1, nnz2 = 2 * n_edges, 3 * n_tri
        b1_idx = jnp.stack([jax.random.randint(ki1, (nnz1,), 0, n_nodes),
                            jax.random.randint(kj1, (nnz1,), 0, n_edges)])
        b1_val = jnp.where(jax.random.bernoulli(kv1, 0.5, (nnz1,)),
                           1.0, -1.0).astype(jnp.float32)
        b2_idx = jnp.stack([jax.random.randint(ki2, (nnz2,), 0, n_edges),
                            jax.random.randint(kj2, (nnz2,), 0, n_tri)])
        b2_val = jnp.where(jax.random.bernoulli(kv2, 0.5, (nnz2,)),
                           1.0, -1.0).astype(jnp.float32)
        graphs.append((z0, z1, z2, (b1_idx, b1_val), (b2_idx, b2_val)))

    outs = san_forward_many(params, graphs, k=k)
    jax.block_until_ready(outs)

    # sanity check each graph against the pure-JAX reference (loose tol:
    # approx reciprocal in the kernel softmax + TPU matmul precision)
    max_err = 0.0
    for (z0, z1, z2, b1, b2), (z0p, z1p, z2p) in zip(graphs, outs):
        r0, r1, r2 = san_reference(params, z0, z1, z2, b1, b2, k=k)
        assert z0p.shape == (n_nodes, out_size)
        assert z1p.shape == (n_edges, out_size)
        assert z2p.shape == (n_tri, out_size)
        assert bool(jnp.all(jnp.isfinite(z0p)) & jnp.all(jnp.isfinite(z1p))
                    & jnp.all(jnp.isfinite(z2p)))
        max_err = max(max_err,
                      float(jnp.max(jnp.abs(z0p - r0))),
                      float(jnp.max(jnp.abs(z1p - r1))),
                      float(jnp.max(jnp.abs(z2p - r2))))
    assert max_err < 2e-2, f"mismatch vs reference: {max_err}"
    print("KERNEL_OK")
</pallas_src>

<mosaic_0001>
module attributes {stable_mosaic.version = 11 : i64} {
  func.func @_san_fused_kernel(%arg0: i32, %arg1: memref<1x56x8xf32, #tpu.memory_space<vmem>>, %arg2: memref<1x24x32xf32, #tpu.memory_space<vmem>>, %arg3: memref<1x32x24xf32, #tpu.memory_space<vmem>>, %arg4: memref<8x64xf32, #tpu.memory_space<vmem>>, %arg5: memref<64x14xf32, #tpu.memory_space<vmem>>, %arg6: memref<16x10xf32, #tpu.memory_space<vmem>>, %arg7: memref<1x56x16xf32, #tpu.memory_space<vmem>>) attributes {dimension_semantics = [#tpu.dimension_semantics<parallel>], iteration_bounds = array<i64: 4>, scalar_prefetch = 0 : i64, scratch_operands = 0 : i64, tpu.core_type = #tpu.core_type<tc>, window_params = [{transform_indices = @transform_0, window_bounds = array<i64: 1, 56, 8>}, {transform_indices = @transform_1, window_bounds = array<i64: 1, 24, 32>}, {transform_indices = @transform_2, window_bounds = array<i64: 1, 32, 24>}, {pipeline_mode = #tpu.pipeline_mode<synchronous>, transform_indices = @transform_3, window_bounds = array<i64: 8, 64>}, {pipeline_mode = #tpu.pipeline_mode<synchronous>, transform_indices = @transform_4, window_bounds = array<i64: 64, 14>}, {pipeline_mode = #tpu.pipeline_mode<synchronous>, transform_indices = @transform_5, window_bounds = array<i64: 16, 10>}, {transform_indices = @transform_6, window_bounds = array<i64: 1, 56, 16>}]} {
    %c0 = arith.constant 0 : index
    %c0_0 = arith.constant 0 : index
    %c0_1 = arith.constant 0 : index
    %0 = vector.load %arg1[%c0, %c0_0, %c0_1] : memref<1x56x8xf32, #tpu.memory_space<vmem>>, vector<1x56x8xf32>
    %1 = vector.shape_cast %0 : vector<1x56x8xf32> to vector<56x8xf32>
    %c0_2 = arith.constant 0 : index
    %c0_3 = arith.constant 0 : index
    %c0_4 = arith.constant 0 : index
    %2 = vector.load %arg2[%c0_2, %c0_3, %c0_4] : memref<1x24x32xf32, #tpu.memory_space<vmem>>, vector<1x24x32xf32>
    %3 = vector.shape_cast %2 : vector<1x24x32xf32> to vector<24x32xf32>
    %c0_5 = arith.constant 0 : index
    %c0_6 = arith.constant 0 : index
    %c0_7 = arith.constant 0 : index
    %4 = vector.load %arg3[%c0_5, %c0_6, %c0_7] : memref<1x32x24xf32, #tpu.memory_space<vmem>>, vector<1x32x24xf32>
    %5 = vector.shape_cast %4 : vector<1x32x24xf32> to vector<32x24xf32>
    %6 = vector.extract_strided_slice %1 {offsets = [0, 0], sizes = [16, 8], strides = [1, 1]} : vector<56x8xf32> to vector<16x8xf32>
    %7 = vector.extract_strided_slice %1 {offsets = [16, 0], sizes = [32, 8], strides = [1, 1]} : vector<56x8xf32> to vector<32x8xf32>
    %8 = vector.extract_strided_slice %1 {offsets = [48, 0], sizes = [8, 8], strides = [1, 1]} : vector<56x8xf32> to vector<8x8xf32>
    %9 = vector.extract_strided_slice %3 {offsets = [0, 0], sizes = [16, 32], strides = [1, 1]} : vector<24x32xf32> to vector<16x32xf32>
    %10 = vector.extract_strided_slice %3 {offsets = [16, 0], sizes = [8, 32], strides = [1, 1]} : vector<24x32xf32> to vector<8x32xf32>
    %11 = vector.extract_strided_slice %5 {offsets = [0, 0], sizes = [32, 16], strides = [1, 1]} : vector<32x24xf32> to vector<32x16xf32>
    %12 = vector.extract_strided_slice %5 {offsets = [0, 16], sizes = [32, 8], strides = [1, 1]} : vector<32x24xf32> to vector<32x8xf32>
    %c0_8 = arith.constant 0 : index
    %c0_9 = arith.constant 0 : index
    %13 = vector.load %arg4[%c0_8, %c0_9] : memref<8x64xf32, #tpu.memory_space<vmem>>, vector<8x64xf32>
    %c0_10 = arith.constant 0 : index
    %c0_11 = arith.constant 0 : index
    %14 = vector.load %arg5[%c0_10, %c0_11] : memref<64x14xf32, #tpu.memory_space<vmem>>, vector<64x14xf32>
    %c0_12 = arith.constant 0 : index
    %c0_13 = arith.constant 0 : index
    %15 = vector.load %arg6[%c0_12, %c0_13] : memref<16x10xf32, #tpu.memory_space<vmem>>, vector<16x10xf32>
    %cst = arith.constant dense<0.000000e+00> : vector<16x16xf32>
    %16 = tpu.matmul %9, %11, %cst {dimension_numbers = #tpu.dot_dimension_numbers<[1], [0], [0], [1], [0, 0, 1, 1], [], []>} : vector<16x32xf32>, vector<32x16xf32>, vector<16x16xf32> -> vector<16x16xf32>
    %cst_14 = arith.constant 0.000000e+00 : f32
    %17 = vector.broadcast %cst_14 : f32 to vector<16x16xf32>
    %18 = arith.cmpf one, %16, %17 : vector<16x16xf32>
    %cst_15 = arith.constant dense<0.000000e+00> : vector<32x32xf32>
    %19 = tpu.matmul %11, %9, %cst_15 {dimension_numbers = #tpu.dot_dimension_numbers<[1], [0], [0], [1], [0, 0, 1, 1], [], []>} : vector<32x16xf32>, vector<16x32xf32>, vector<32x32xf32> -> vector<32x32xf32>
    %cst_16 = arith.constant 0.000000e+00 : f32
    %20 = vector.broadcast %cst_16 : f32 to vector<32x32xf32>
    %21 = arith.cmpf one, %19, %20 : vector<32x32xf32>
    %cst_17 = arith.constant dense<0.000000e+00> : vector<32x32xf32>
    %22 = tpu.matmul %12, %10, %cst_17 {dimension_numbers = #tpu.dot_dimension_numbers<[1], [0], [0], [1], [0, 0, 1, 1], [], []>} : vector<32x8xf32>, vector<8x32xf32>, vector<32x32xf32> -> vector<32x32xf32>
    %cst_18 = arith.constant 0.000000e+00 : f32
    %23 = vector.broadcast %cst_18 : f32 to vector<32x32xf32>
    %24 = arith.cmpf one, %22, %23 : vector<32x32xf32>
    %cst_19 = arith.constant dense<0.000000e+00> : vector<8x8xf32>
    %25 = tpu.matmul %10, %12, %cst_19 {dimension_numbers = #tpu.dot_dimension_numbers<[1], [0], [0], [1], [0, 0, 1, 1], [], []>} : vector<8x32xf32>, vector<32x8xf32>, vector<8x8xf32> -> vector<8x8xf32>
    %cst_20 = arith.constant 0.000000e+00 : f32
    %26 = vector.broadcast %cst_20 : f32 to vector<8x8xf32>
    %27 = arith.cmpf one, %25, %26 : vector<8x8xf32>
    %cst_21 = arith.constant dense<0.000000e+00> : vector<16x64xf32>
    %28 = tpu.matmul %6, %13, %cst_21 {dimension_numbers = #tpu.dot_dimension_numbers<[1], [0], [0], [1], [0, 0, 1, 1], [], []>} : vector<16x8xf32>, vector<8x64xf32>, vector<16x64xf32> -> vector<16x64xf32>
    %cst_22 = arith.constant dense<0.000000e+00> : vector<32x64xf32>
    %29 = tpu.matmul %7, %13, %cst_22 {dimension_numbers = #tpu.dot_dimension_numbers<[1], [0], [0], [1], [0, 0, 1, 1], [], []>} : vector<32x8xf32>, vector<8x64xf32>, vector<32x64xf32> -> vector<32x64xf32>
    %cst_23 = arith.constant dense<0.000000e+00> : vector<8x64xf32>
    %30 = tpu.matmul %8, %13, %cst_23 {dimension_numbers = #tpu.dot_dimension_numbers<[1], [0], [0], [1], [0, 0, 1, 1], [], []>} : vector<8x8xf32>, vector<8x64xf32>, vector<8x64xf32> -> vector<8x64xf32>
    %31 = vector.extract_strided_slice %28 {offsets = [0, 0], sizes = [16, 16], strides = [1, 1]} : vector<16x64xf32> to vector<16x16xf32>
    %32 = vector.extract_strided_slice %28 {offsets = [0, 16], sizes = [16, 16], strides = [1, 1]} : vector<16x64xf32> to vector<16x16xf32>
    %33 = vector.extract_strided_slice %29 {offsets = [0, 0], sizes = [32, 16], strides = [1, 1]} : vector<32x64xf32> to vector<32x16xf32>
    %34 = vector.extract_strided_slice %29 {offsets = [0, 16], sizes = [32, 16], strides = [1, 1]} : vector<32x64xf32> to vector<32x16xf32>
    %35 = vector.extract_strided_slice %29 {offsets = [0, 32], sizes = [32, 16], strides = [1, 1]} : vector<32x64xf32> to vector<32x16xf32>
    %36 = vector.extract_strided_slice %29 {offsets = [0, 48], sizes = [32, 16], strides = [1, 1]} : vector<32x64xf32> to vector<32x16xf32>
    %37 = vector.extract_strided_slice %30 {offsets = [0, 32], sizes = [8, 16], strides = [1, 1]} : vector<8x64xf32> to vector<8x16xf32>
    %cst_24 = arith.constant dense<0.000000e+00> : vector<32x16xf32>
    %38 = tpu.matmul %11, %32, %cst_24 {dimension_numbers = #tpu.dot_dimension_numbers<[1], [0], [0], [1], [0, 0, 1, 1], [], []>} : vector<32x16xf32>, vector<16x16xf32>, vector<32x16xf32> -> vector<32x16xf32>
    %cst_25 = arith.constant dense<0.000000e+00> : vector<8x16xf32>
    %39 = tpu.matmul %10, %36, %cst_25 {dimension_numbers = #tpu.dot_dimension_numbers<[1], [0], [0], [1], [0, 0, 1, 1], [], []>} : vector<8x32xf32>, vector<32x16xf32>, vector<8x16xf32> -> vector<8x16xf32>
    %cst_26 = arith.constant dense<0.000000e+00> : vector<16x16xf32>
    %40 = tpu.matmul %9, %34, %cst_26 {dimension_numbers = #tpu.dot_dimension_numbers<[1], [0], [0], [1], [0, 0, 1, 1], [], []>} : vector<16x32xf32>, vector<32x16xf32>, vector<16x16xf32> -> vector<16x16xf32>
    %41 = vector.extract_strided_slice %14 {offsets = [0, 0], sizes = [64, 4], strides = [1, 1]} : vector<64x14xf32> to vector<64x4xf32>
    %cst_27 = arith.constant dense<0.000000e+00> : vector<16x4xf32>
    %42 = tpu.matmul %28, %41, %cst_27 {dimension_numbers = #tpu.dot_dimension_numbers<[1], [0], [0], [1], [0, 0, 1, 1], [], []>} : vector<16x64xf32>, vector<64x4xf32>, vector<16x4xf32> -> vector<16x4xf32>
    %43 = vector.extract_strided_slice %14 {offsets = [0, 4], sizes = [64, 6], strides = [1, 1]} : vector<64x14xf32> to vector<64x6xf32>
    %cst_28 = arith.constant dense<0.000000e+00> : vector<32x6xf32>
    %44 = tpu.matmul %29, %43, %cst_28 {dimension_numbers = #tpu.dot_dimension_numbers<[1], [0], [0], [1], [0, 0, 1, 1], [], []>} : vector<32x64xf32>, vector<64x6xf32>, vector<32x6xf32> -> vector<32x6xf32>
    %45 = vector.extract_strided_slice %15 {offsets = [0, 0], sizes = [16, 6], strides = [1, 1]} : vector<16x10xf32> to vector<16x6xf32>
    %cst_29 = arith.constant dense<0.000000e+00> : vector<32x6xf32>
    %46 = tpu.matmul %38, %45, %cst_29 {dimension_numbers = #tpu.dot_dimension_numbers<[1], [0], [0], [1], [0, 0, 1, 1], [], []>} : vector<32x16xf32>, vector<16x6xf32>, vector<32x6xf32> -> vector<32x6xf32>
    %47 = arith.addf %44, %46 : vector<32x6xf32>
    %48 = vector.extract_strided_slice %14 {offsets = [0, 10], sizes = [64, 4], strides = [1, 1]} : vector<64x14xf32> to vector<64x4xf32>
    %cst_30 = arith.constant dense<0.000000e+00> : vector<8x4xf32>
    %49 = tpu.matmul %30, %48, %cst_30 {dimension_numbers = #tpu.dot_dimension_numbers<[1], [0], [0], [1], [0, 0, 1, 1], [], []>} : vector<8x64xf32>, vector<64x4xf32>, vector<8x4xf32> -> vector<8x4xf32>
    %50 = vector.extract_strided_slice %15 {offsets = [0, 6], sizes = [16, 4], strides = [1, 1]} : vector<16x10xf32> to vector<16x4xf32>
    %cst_31 = arith.constant dense<0.000000e+00> : vector<8x4xf32>
    %51 = tpu.matmul %39, %50, %cst_31 {dimension_numbers = #tpu.dot_dimension_numbers<[1], [0], [0], [1], [0, 0, 1, 1], [], []>} : vector<8x16xf32>, vector<16x4xf32>, vector<8x4xf32> -> vector<8x4xf32>
    %52 = arith.addf %49, %51 : vector<8x4xf32>
    %53 = vector.extract_strided_slice %42 {offsets = [0, 0], sizes = [16, 1], strides = [1, 1]} : vector<16x4xf32> to vector<16x1xf32>
    %54 = vector.extract_strided_slice %42 {offsets = [0, 1], sizes = [16, 1], strides = [1, 1]} : vector<16x4xf32> to vector<16x1xf32>
    %55 = tpu.transpose %54, [1, 0] : vector<16x1xf32> -> vector<1x16xf32>
    %56 = vector.broadcast %53 : vector<16x1xf32> to vector<16x16xf32>
    %57 = vector.broadcast %55 : vector<1x16xf32> to vector<16x16xf32>
    %58 = arith.addf %56, %57 : vector<16x16xf32>
    %cst_32 = arith.constant 0.000000e+00 : f32
    %59 = vector.broadcast %cst_32 : f32 to vector<16x16xf32>
    %60 = arith.cmpf ogt, %58, %59 : vector<16x16xf32>
    %cst_33 = arith.constant 2.000000e-01 : f32
    %61 = vector.broadcast %cst_33 : f32 to vector<16x16xf32>
    %62 = arith.mulf %61, %58 : vector<16x16xf32>
    %63 = arith.select %60, %58, %62 : vector<16x16xi1>, vector<16x16xf32>
    %cst_34 = arith.constant -9.000000e+15 : f32
    %64 = vector.broadcast %cst_34 : f32 to vector<16x16xf32>
    %65 = arith.select %18, %63, %64 : vector<16x16xi1>, vector<16x16xf32>
    %cst_35 = arith.constant dense<0xFF800000> : vector<16xf32>
    %66 = vector.multi_reduction <maximumf>, %65, %cst_35 [1] : vector<16x16xf32> to vector<16xf32>
    %67 = vector.shape_cast %66 : vector<16xf32> to vector<16x1xf32>
    %68 = vector.broadcast %67 : vector<16x1xf32> to vector<16x16xf32>
    %69 = arith.subf %65, %68 : vector<16x16xf32>
    %70 = math.exp %69 : vector<16x16xf32>
    %cst_36 = arith.constant dense<0.000000e+00> : vector<16xf32>
    %71 = vector.multi_reduction <add>, %70, %cst_36 [1] : vector<16x16xf32> to vector<16xf32>
    %72 = vector.shape_cast %71 : vector<16xf32> to vector<16x1xf32>
    %73 = tpu.reciprocal %72 {approx = true} : vector<16x1xf32> -> vector<16x1xf32>
    %74 = vector.broadcast %73 : vector<16x1xf32> to vector<16x16xf32>
    %75 = arith.mulf %70, %74 : vector<16x16xf32>
    %76 = vector.extract_strided_slice %42 {offsets = [0, 2], sizes = [16, 1], strides = [1, 1]} : vector<16x4xf32> to vector<16x1xf32>
    %77 = vector.extract_strided_slice %42 {offsets = [0, 3], sizes = [16, 1], strides = [1, 1]} : vector<16x4xf32> to vector<16x1xf32>
    %78 = tpu.transpose %77, [1, 0] : vector<16x1xf32> -> vector<1x16xf32>
    %79 = vector.broadcast %76 : vector<16x1xf32> to vector<16x16xf32>
    %80 = vector.broadcast %78 : vector<1x16xf32> to vector<16x16xf32>
    %81 = arith.addf %79, %80 : vector<16x16xf32>
    %cst_37 = arith.constant 0.000000e+00 : f32
    %82 = vector.broadcast %cst_37 : f32 to vector<16x16xf32>
    %83 = arith.cmpf ogt, %81, %82 : vector<16x16xf32>
    %cst_38 = arith.constant 2.000000e-01 : f32
    %84 = vector.broadcast %cst_38 : f32 to vector<16x16xf32>
    %85 = arith.mulf %84, %81 : vector<16x16xf32>
    %86 = arith.select %83, %81, %85 : vector<16x16xi1>, vector<16x16xf32>
    %cst_39 = arith.constant -9.000000e+15 : f32
    %87 = vector.broadcast %cst_39 : f32 to vector<16x16xf32>
    %88 = arith.select %18, %86, %87 : vector<16x16xi1>, vector<16x16xf32>
    %cst_40 = arith.constant dense<0xFF800000> : vector<16xf32>
    %89 = vector.multi_reduction <maximumf>, %88, %cst_40 [1] : vector<16x16xf32> to vector<16xf32>
    %90 = vector.shape_cast %89 : vector<16xf32> to vector<16x1xf32>
    %91 = vector.broadcast %90 : vector<16x1xf32> to vector<16x16xf32>
    %92 = arith.subf %88, %91 : vector<16x16xf32>
    %93 = math.exp %92 : vector<16x16xf32>
    %cst_41 = arith.constant dense<0.000000e+00> : vector<16xf32>
    %94 = vector.multi_reduction <add>, %93, %cst_41 [1] : vector<16x16xf32> to vector<16xf32>
    %95 = vector.shape_cast %94 : vector<16xf32> to vector<16x1xf32>
    %96 = tpu.reciprocal %95 {approx = true} : vector<16x1xf32> -> vector<16x1xf32>
    %97 = vector.broadcast %96 : vector<16x1xf32> to vector<16x16xf32>
    %98 = arith.mulf %93, %97 : vector<16x16xf32>
    %99 = vector.extract_strided_slice %47 {offsets = [0, 0], sizes = [32, 1], strides = [1, 1]} : vector<32x6xf32> to vector<32x1xf32>
    %100 = vector.extract_strided_slice %47 {offsets = [0, 1], sizes = [32, 1], strides = [1, 1]} : vector<32x6xf32> to vector<32x1xf32>
    %101 = tpu.transpose %100, [1, 0] : vector<32x1xf32> -> vector<1x32xf32>
    %102 = vector.broadcast %99 : vector<32x1xf32> to vector<32x32xf32>
    %103 = vector.broadcast %101 : vector<1x32xf32> to vector<32x32xf32>
    %104 = arith.addf %102, %103 : vector<32x32xf32>
    %cst_42 = arith.constant 0.000000e+00 : f32
    %105 = vector.broadcast %cst_42 : f32 to vector<32x32xf32>
    %106 = arith.cmpf ogt, %104, %105 : vector<32x32xf32>
    %cst_43 = arith.constant 2.000000e-01 : f32
    %107 = vector.broadcast %cst_43 : f32 to vector<32x32xf32>
    %108 = arith.mulf %107, %104 : vector<32x32xf32>
    %109 = arith.select %106, %104, %108 : vector<32x32xi1>, vector<32x32xf32>
    %cst_44 = arith.constant -9.000000e+15 : f32
    %110 = vector.broadcast %cst_44 : f32 to vector<32x32xf32>
    %111 = arith.select %21, %109, %110 : vector<32x32xi1>, vector<32x32xf32>
    %cst_45 = arith.constant dense<0xFF800000> : vector<32xf32>
    %112 = vector.multi_reduction <maximumf>, %111, %cst_45 [1] : vector<32x32xf32> to vector<32xf32>
    %113 = vector.shape_cast %112 : vector<32xf32> to vector<32x1xf32>
    %114 = vector.broadcast %113 : vector<32x1xf32> to vector<32x32xf32>
    %115 = arith.subf %111, %114 : vector<32x32xf32>
    %116 = math.exp %115 : vector<32x32xf32>
    %cst_46 = arith.constant dense<0.000000e+00> : vector<32xf32>
    %117 = vector.multi_reduction <add>, %116, %cst_46 [1] : vector<32x32xf32> to vector<32xf32>
    %118 = vector.shape_cast %117 : vector<32xf32> to vector<32x1xf32>
    %119 = tpu.reciprocal %118 {approx = true} : vector<32x1xf32> -> vector<32x1xf32>
    %120 = vector.broadcast %119 : vector<32x1xf32> to vector<32x32xf32>
    %121 = arith.mulf %116, %120 : vector<32x32xf32>
    %122 = vector.extract_strided_slice %47 {offsets = [0, 2], sizes = [32, 1], strides = [1, 1]} : vector<32x6xf32> to vector<32x1xf32>
    %123 = vector.extract_strided_slice %47 {offsets = [0, 3], sizes = [32, 1], strides = [1, 1]} : vector<32x6xf32> to vector<32x1xf32>
    %124 = tpu.transpose %123, [1, 0] : vector<32x1xf32> -> vector<1x32xf32>
    %125 = vector.broadcast %122 : vector<32x1xf32> to vector<32x32xf32>
    %126 = vector.broadcast %124 : vector<1x32xf32> to vector<32x32xf32>
    %127 = arith.addf %125, %126 : vector<32x32xf32>
    %cst_47 = arith.constant 0.000000e+00 : f32
    %128 = vector.broadcast %cst_47 : f32 to vector<32x32xf32>
    %129 = arith.cmpf ogt, %127, %128 : vector<32x32xf32>
    %cst_48 = arith.constant 2.000000e-01 : f32
    %130 = vector.broadcast %cst_48 : f32 to vector<32x32xf32>
    %131 = arith.mulf %130, %127 : vector<32x32xf32>
    %132 = arith.select %129, %127, %131 : vector<32x32xi1>, vector<32x32xf32>
    %cst_49 = arith.constant -9.000000e+15 : f32
    %133 = vector.broadcast %cst_49 : f32 to vector<32x32xf32>
    %134 = arith.select %21, %132, %133 : vector<32x32xi1>, vector<32x32xf32>
    %cst_50 = arith.constant dense<0xFF800000> : vector<32xf32>
    %135 = vector.multi_reduction <maximumf>, %134, %cst_50 [1] : vector<32x32xf32> to vector<32xf32>
    %136 = vector.shape_cast %135 : vector<32xf32> to vector<32x1xf32>
    %137 = vector.broadcast %136 : vector<32x1xf32> to vector<32x32xf32>
    %138 = arith.subf %134, %137 : vector<32x32xf32>
    %139 = math.exp %138 : vector<32x32xf32>
    %cst_51 = arith.constant dense<0.000000e+00> : vector<32xf32>
    %140 = vector.multi_reduction <add>, %139, %cst_51 [1] : vector<32x32xf32> to vector<32xf32>
    %141 = vector.shape_cast %140 : vector<32xf32> to vector<32x1xf32>
    %142 = tpu.reciprocal %141 {approx = true} : vector<32x1xf32> -> vector<32x1xf32>
    %143 = vector.broadcast %142 : vector<32x1xf32> to vector<32x32xf32>
    %144 = arith.mulf %139, %143 : vector<32x32xf32>
    %145 = vector.extract_strided_slice %47 {offsets = [0, 4], sizes = [32, 1], strides = [1, 1]} : vector<32x6xf32> to vector<32x1xf32>
    %146 = vector.extract_strided_slice %47 {offsets = [0, 5], sizes = [32, 1], strides = [1, 1]} : vector<32x6xf32> to vector<32x1xf32>
    %147 = tpu.transpose %146, [1, 0] : vector<32x1xf32> -> vector<1x32xf32>
    %148 = vector.broadcast %145 : vector<32x1xf32> to vector<32x32xf32>
    %149 = vector.broadcast %147 : vector<1x32xf32> to vector<32x32xf32>
    %150 = arith.addf %148, %149 : vector<32x32xf32>
    %cst_52 = arith.constant 0.000000e+00 : f32
    %151 = vector.broadcast %cst_52 : f32 to vector<32x32xf32>
    %152 = arith.cmpf ogt, %150, %151 : vector<32x32xf32>
    %cst_53 = arith.constant 2.000000e-01 : f32
    %153 = vector.broadcast %cst_53 : f32 to vector<32x32xf32>
    %154 = arith.mulf %153, %150 : vector<32x32xf32>
    %155 = arith.select %152, %150, %154 : vector<32x32xi1>, vector<32x32xf32>
    %cst_54 = arith.constant -9.000000e+15 : f32
    %156 = vector.broadcast %cst_54 : f32 to vector<32x32xf32>
    %157 = arith.select %24, %155, %156 : vector<32x32xi1>, vector<32x32xf32>
    %cst_55 = arith.constant dense<0xFF800000> : vector<32xf32>
    %158 = vector.multi_reduction <maximumf>, %157, %cst_55 [1] : vector<32x32xf32> to vector<32xf32>
    %159 = vector.shape_cast %158 : vector<32xf32> to vector<32x1xf32>
    %160 = vector.broadcast %159 : vector<32x1xf32> to vector<32x32xf32>
    %161 = arith.subf %157, %160 : vector<32x32xf32>
    %162 = math.exp %161 : vector<32x32xf32>
    %cst_56 = arith.constant dense<0.000000e+00> : vector<32xf32>
    %163 = vector.multi_reduction <add>, %162, %cst_56 [1] : vector<32x32xf32> to vector<32xf32>
    %164 = vector.shape_cast %163 : vector<32xf32> to vector<32x1xf32>
    %165 = tpu.reciprocal %164 {approx = true} : vector<32x1xf32> -> vector<32x1xf32>
    %166 = vector.broadcast %165 : vector<32x1xf32> to vector<32x32xf32>
    %167 = arith.mulf %162, %166 : vector<32x32xf32>
    %168 = vector.extract_strided_slice %52 {offsets = [0, 0], sizes = [8, 1], strides = [1, 1]} : vector<8x4xf32> to vector<8x1xf32>
    %169 = vector.extract_strided_slice %52 {offsets = [0, 1], sizes = [8, 1], strides = [1, 1]} : vector<8x4xf32> to vector<8x1xf32>
    %170 = tpu.transpose %169, [1, 0] : vector<8x1xf32> -> vector<1x8xf32>
    %171 = vector.broadcast %168 : vector<8x1xf32> to vector<8x8xf32>
    %172 = vector.broadcast %170 : vector<1x8xf32> to vector<8x8xf32>
    %173 = arith.addf %171, %172 : vector<8x8xf32>
    %cst_57 = arith.constant 0.000000e+00 : f32
    %174 = vector.broadcast %cst_57 : f32 to vector<8x8xf32>
    %175 = arith.cmpf ogt, %173, %174 : vector<8x8xf32>
    %cst_58 = arith.constant 2.000000e-01 : f32
    %176 = vector.broadcast %cst_58 : f32 to vector<8x8xf32>
    %177 = arith.mulf %176, %173 : vector<8x8xf32>
    %178 = arith.select %175, %173, %177 : vector<8x8xi1>, vector<8x8xf32>
    %cst_59 = arith.constant -9.000000e+15 : f32
    %179 = vector.broadcast %cst_59 : f32 to vector<8x8xf32>
    %180 = arith.select %27, %178, %179 : vector<8x8xi1>, vector<8x8xf32>
    %cst_60 = arith.constant dense<0xFF800000> : vector<8xf32>
    %181 = vector.multi_reduction <maximumf>, %180, %cst_60 [1] : vector<8x8xf32> to vector<8xf32>
    %182 = vector.shape_cast %181 : vector<8xf32> to vector<8x1xf32>
    %183 = vector.broadcast %182 : vector<8x1xf32> to vector<8x8xf32>
    %184 = arith.subf %180, %183 : vector<8x8xf32>
    %185 = math.exp %184 : vector<8x8xf32>
    %cst_61 = arith.constant dense<0.000000e+00> : vector<8xf32>
    %186 = vector.multi_reduction <add>, %185, %cst_61 [1] : vector<8x8xf32> to vector<8xf32>
    %187 = vector.shape_cast %186 : vector<8xf32> to vector<8x1xf32>
    %188 = tpu.reciprocal %187 {approx = true} : vector<8x1xf32> -> vector<8x1xf32>
    %189 = vector.broadcast %188 : vector<8x1xf32> to vector<8x8xf32>
    %190 = arith.mulf %185, %189 : vector<8x8xf32>
    %191 = vector.extract_strided_slice %52 {offsets = [0, 2], sizes = [8, 1], strides = [1, 1]} : vector<8x4xf32> to vector<8x1xf32>
    %192 = vector.extract_strided_slice %52 {offsets = [0, 3], sizes = [8, 1], strides = [1, 1]} : vector<8x4xf32> to vector<8x1xf32>
    %193 = tpu.transpose %192, [1, 0] : vector<8x1xf32> -> vector<1x8xf32>
    %194 = vector.broadcast %191 : vector<8x1xf32> to vector<8x8xf32>
    %195 = vector.broadcast %193 : vector<1x8xf32> to vector<8x8xf32>
    %196 = arith.addf %194, %195 : vector<8x8xf32>
    %cst_62 = arith.constant 0.000000e+00 : f32
    %197 = vector.broadcast %cst_62 : f32 to vector<8x8xf32>
    %198 = arith.cmpf ogt, %196, %197 : vector<8x8xf32>
    %cst_63 = arith.constant 2.000000e-01 : f32
    %199 = vector.broadcast %cst_63 : f32 to vector<8x8xf32>
    %200 = arith.mulf %199, %196 : vector<8x8xf32>
    %201 = arith.select %198, %196, %200 : vector<8x8xi1>, vector<8x8xf32>
    %cst_64 = arith.constant -9.000000e+15 : f32
    %202 = vector.broadcast %cst_64 : f32 to vector<8x8xf32>
    %203 = arith.select %27, %201, %202 : vector<8x8xi1>, vector<8x8xf32>
    %cst_65 = arith.constant dense<0xFF800000> : vector<8xf32>
    %204 = vector.multi_reduction <maximumf>, %203, %cst_65 [1] : vector<8x8xf32> to vector<8xf32>
    %205 = vector.shape_cast %204 : vector<8xf32> to vector<8x1xf32>
    %206 = vector.broadcast %205 : vector<8x1xf32> to vector<8x8xf32>
    %207 = arith.subf %203, %206 : vector<8x8xf32>
    %208 = math.exp %207 : vector<8x8xf32>
    %cst_66 = arith.constant dense<0.000000e+00> : vector<8xf32>
    %209 = vector.multi_reduction <add>, %208, %cst_66 [1] : vector<8x8xf32> to vector<8xf32>
    %210 = vector.shape_cast %209 : vector<8xf32> to vector<8x1xf32>
    %211 = tpu.reciprocal %210 {approx = true} : vector<8x1xf32> -> vector<8x1xf32>
    %212 = vector.broadcast %211 : vector<8x1xf32> to vector<8x8xf32>
    %213 = arith.mulf %208, %212 : vector<8x8xf32>
    %cst_67 = arith.constant dense<0.000000e+00> : vector<16x16xf32>
    %214 = tpu.matmul %75, %31, %cst_67 {dimension_numbers = #tpu.dot_dimension_numbers<[1], [0], [0], [1], [0, 0, 1, 1], [], []>} : vector<16x16xf32>, vector<16x16xf32>, vector<16x16xf32> -> vector<16x16xf32>
    %cst_68 = arith.constant dense<0.000000e+00> : vector<16x16xf32>
    %215 = tpu.matmul %98, %40, %cst_68 {dimension_numbers = #tpu.dot_dimension_numbers<[1], [0], [0], [1], [0, 0, 1, 1], [], []>} : vector<16x16xf32>, vector<16x16xf32>, vector<16x16xf32> -> vector<16x16xf32>
    %216 = arith.addf %214, %215 : vector<16x16xf32>
    %217 = arith.negf %216 : vector<16x16xf32>
    %218 = math.exp %217 : vector<16x16xf32>
    %cst_69 = arith.constant 1.000000e+00 : f32
    %219 = vector.broadcast %cst_69 : f32 to vector<16x16xf32>
    %220 = arith.addf %219, %218 : vector<16x16xf32>
    %221 = arith.divf %219, %220 : vector<16x16xf32>
    %c0_70 = arith.constant 0 : index
    %c0_71 = arith.constant 0 : index
    %c0_72 = arith.constant 0 : index
    %222 = vector.load %arg7[%c0_70, %c0_71, %c0_72] : memref<1x56x16xf32, #tpu.memory_space<vmem>>, vector<1x16x16xf32>
    %223 = vector.shape_cast %222 : vector<1x16x16xf32> to vector<16x16xf32>
    %224 = vector.shape_cast %221 : vector<16x16xf32> to vector<1x16x16xf32>
    tpu.vector_store %arg7[%c0_70, %c0_71, %c0_72], %224 {strides = array<i32>} : memref<1x56x16xf32, #tpu.memory_space<vmem>>, vector<1x16x16xf32>,
    %cst_73 = arith.constant dense<0.000000e+00> : vector<32x16xf32>
    %225 = tpu.matmul %121, %33, %cst_73 {dimension_numbers = #tpu.dot_dimension_numbers<[1], [0], [0], [1], [0, 0, 1, 1], [], []>} : vector<32x32xf32>, vector<32x16xf32>, vector<32x16xf32> -> vector<32x16xf32>
    %cst_74 = arith.constant dense<0.000000e+00> : vector<32x16xf32>
    %226 = tpu.matmul %144, %38, %cst_74 {dimension_numbers = #tpu.dot_dimension_numbers<[1], [0], [0], [1], [0, 0, 1, 1], [], []>} : vector<32x32xf32>, vector<32x16xf32>, vector<32x16xf32> -> vector<32x16xf32>
    %227 = arith.addf %225, %226 : vector<32x16xf32>
    %cst_75 = arith.constant dense<0.000000e+00> : vector<32x16xf32>
    %228 = tpu.matmul %167, %35, %cst_75 {dimension_numbers = #tpu.dot_dimension_numbers<[1], [0], [0], [1], [0, 0, 1, 1], [], []>} : vector<32x32xf32>, vector<32x16xf32>, vector<32x16xf32> -> vector<32x16xf32>
    %229 = arith.addf %227, %228 : vector<32x16xf32>
    %230 = arith.negf %229 : vector<32x16xf32>
    %231 = math.exp %230 : vector<32x16xf32>
    %cst_76 = arith.constant 1.000000e+00 : f32
    %232 = vector.broadcast %cst_76 : f32 to vector<32x16xf32>
    %233 = arith.addf %232, %231 : vector<32x16xf32>
    %234 = arith.divf %232, %233 : vector<32x16xf32>
    %c0_77 = arith.constant 0 : index
    %c16 = arith.constant 16 : index
    %c0_78 = arith.constant 0 : index
    %235 = vector.load %arg7[%c0_77, %c16, %c0_78] : memref<1x56x16xf32, #tpu.memory_space<vmem>>, vector<1x32x16xf32>
    %236 = vector.shape_cast %235 : vector<1x32x16xf32> to vector<32x16xf32>
    %237 = vector.shape_cast %234 : vector<32x16xf32> to vector<1x32x16xf32>
    tpu.vector_store %arg7[%c0_77, %c16, %c0_78], %237 {strides = array<i32>} : memref<1x56x16xf32, #tpu.memory_space<vmem>>, vector<1x32x16xf32>,
    %cst_79 = arith.constant dense<0.000000e+00> : vector<8x16xf32>
    %238 = tpu.matmul %190, %37, %cst_79 {dimension_numbers = #tpu.dot_dimension_numbers<[1], [0], [0], [1], [0, 0, 1, 1], [], []>} : vector<8x8xf32>, vector<8x16xf32>, vector<8x16xf32> -> vector<8x16xf32>
    %cst_80 = arith.constant dense<0.000000e+00> : vector<8x16xf32>
    %239 = tpu.matmul %213, %39, %cst_80 {dimension_numbers = #tpu.dot_dimension_numbers<[1], [0], [0], [1], [0, 0, 1, 1], [], []>} : vector<8x8xf32>, vector<8x16xf32>, vector<8x16xf32> -> vector<8x16xf32>
    %240 = arith.addf %238, %239 : vector<8x16xf32>
    %241 = arith.negf %240 : vector<8x16xf32>
    %242 = math.exp %241 : vector<8x16xf32>
    %cst_81 = arith.constant 1.000000e+00 : f32
    %243 = vector.broadcast %cst_81 : f32 to vector<8x16xf32>
    %244 = arith.addf %243, %242 : vector<8x16xf32>
    %245 = arith.divf %243, %244 : vector<8x16xf32>
    %c0_82 = arith.constant 0 : index
    %c48 = arith.constant 48 : index
    %c0_83 = arith.constant 0 : index
    %246 = vector.load %arg7[%c0_82, %c48, %c0_83] : memref<1x56x16xf32, #tpu.memory_space<vmem>>, vector<1x8x16xf32>
    %247 = vector.shape_cast %246 : vector<1x8x16xf32> to vector<8x16xf32>
    %248 = vector.shape_cast %245 : vector<8x16xf32> to vector<1x8x16xf32>
    tpu.vector_store %arg7[%c0_82, %c48, %c0_83], %248 {strides = array<i32>} : memref<1x56x16xf32, #tpu.memory_space<vmem>>, vector<1x8x16xf32>,
    return
  }
  func.func @transform_0(%arg0: i32) -> (i32, i32, i32) {
    %c0_i32 = arith.constant 0 : i32
    %c0_i32_0 = arith.constant 0 : i32
    %c0_i32_1 = arith.constant 0 : i32
    return %arg0, %c0_i32, %c0_i32_0 : i32, i32, i32
  }
  func.func @transform_1(%arg0: i32) -> (i32, i32, i32) {
    %c0_i32 = arith.constant 0 : i32
    %c0_i32_0 = arith.constant 0 : i32
    %c0_i32_1 = arith.constant 0 : i32
    return %arg0, %c0_i32, %c0_i32_0 : i32, i32, i32
  }
  func.func @transform_2(%arg0: i32) -> (i32, i32, i32) {
    %c0_i32 = arith.constant 0 : i32
    %c0_i32_0 = arith.constant 0 : i32
    %c0_i32_1 = arith.constant 0 : i32
    return %arg0, %c0_i32, %c0_i32_0 : i32, i32, i32
  }
  func.func @transform_3(%arg0: i32) -> (i32, i32) {
    %c0_i32 = arith.constant 0 : i32
    %c0_i32_0 = arith.constant 0 : i32
    %c0_i32_1 = arith.constant 0 : i32
    return %c0_i32, %c0_i32_0 : i32, i32
  }
  func.func @transform_4(%arg0: i32) -> (i32, i32) {
    %c0_i32 = arith.constant 0 : i32
    %c0_i32_0 = arith.constant 0 : i32
    %c0_i32_1 = arith.constant 0 : i32
    return %c0_i32, %c0_i32_0 : i32, i32
  }
  func.func @transform_5(%arg0: i32) -> (i32, i32) {
    %c0_i32 = arith.constant 0 : i32
    %c0_i32_0 = arith.constant 0 : i32
    %c0_i32_1 = arith.constant 0 : i32
    return %c0_i32, %c0_i32_0 : i32, i32
  }
  func.func @transform_6(%arg0: i32) -> (i32, i32, i32) {
    %c0_i32 = arith.constant 0 : i32
    %c0_i32_0 = arith.constant 0 : i32
    %c0_i32_1 = arith.constant 0 : i32
    return %arg0, %c0_i32, %c0_i32_0 : i32, i32, i32
  }
}

</mosaic_0001>

<bundles_post_ra>
// kernel: _san_pallas.1
= control target key start
LH: loop header
LB: loop body
LE: loop exit
PB: predicated region body
PF: predicated region fallthrough
CT: control target
= control target key end

     0   :  { %s2357_s21 = smov 0   ;;  %s2952_s0 = inlined_call_operand.vmem [shape: f32[4,56,8], index: 0, kind: input, shape index: {}]   ;;  %s2953_s1 = inlined_call_operand.vmem [shape: f32[4,24,32], index: 1, kind: input, shape index: {}]   ;;  %s2954_s2 = inlined_call_operand.vmem [shape: f32[4,32,24], index: 2, kind: input, shape index: {}]   ;;  %s2955_s3 = inlined_call_operand.vmem [shape: f32[8,64], index: 3, kind: input, shape index: {}]   ;;  %s2956_s4 = inlined_call_operand.vmem [shape: f32[64,14], index: 4, kind: input, shape index: {}]   ;;  %s2957_s5 = inlined_call_operand.vmem [shape: f32[16,10], index: 5, kind: input, shape index: {}]   ;;  %s2958_s6 = inlined_call_operand.vmem [shape: f32[4,56,16], index: 6, kind: output, shape index: {}]  }
   0x1 LB: > { %s2007_s22 = sadd.s32 4294967295, %s2308_s21   ;;  %p2011_p0 = scmp.ge.s32.totalorder %s2308_s21, 1  ;;  %s2308_s21 = sphi %s2357_s21, %s16_s21  }
   0x2   : > { %p232_p1 = scmp.lt.s32.totalorder %s2308_s21, 5 }
   0x4   : > { %p233_p2 = pnand %p2011_p0, %p232_p1 }
   0x5   : > { %p272_p3 = scmp.lt.s32.totalorder (!%p233_p2), %s2007_s22, 3  ;;  %s2310_s28 = smov (!%p233_p2), 112  }
   0x6   : > { %236 = sbr.rel (%p233_p2) target bundleno = 1790 (0x6fe), region = 44  ;;  %s2311_s24 = smov (!%p233_p2), 124  }
   0x7   : > { %s2312_s11 = smov (!%p233_p2), 118   ;;  %s2313_s12 = smov (!%p233_p2), 122  }
   0x8   : > { %s2314_s18 = smov (!%p233_p2), 80   ;;  %s2320_s19 = smov (!%p233_p2), 123  }
   0x9   : > { %s2321_s20 = smov (!%p233_p2), 96  }
   0xb   : > { %s2960_s22 = smov (!%p272_p3, %s2007_s22), 3  ;;  %vm317_vm0 = vcmask 261120   ;;  %v306_v6 = vld [vmem:[%s2955_s3] sm:$0xff]  ;;  %vm403_vm1 = vcmask 64512   ;;  %v2435_v13 = vld [vmem:[%s2956_s4 + $0x28] sm:$0xff]  ;;  %v2440_v14 = vld [vmem:[%s2956_s4 + $0x10] sm:$0xff] }
   0xc   : > { %s2081_s23 = sshll.u32 %s2960_s22, 5  ;;  %s2085_s27 = smul.u32 24, %s2960_s22  ;;  %v2430_v12 = vld [vmem:[%s2956_s4 + $0x20] sm:$0xff]  ;;  %v2447_v16 = vld [vmem:[%s2956_s4 + $0x18] sm:$0xff]  ;;  %v2459_v19 = vld [vmem:[%s2956_s4 + $0x8] sm:$0xff]  ;;  %vm349_vm2 = vcmask 130048  }
   0xd   : > { %s286_s26 = scalar_lea.vmem %s2954_s2, %s2081_s23  ;;  %s2084_s10 = smul.u32 56, %s2960_s22  ;;  %v2117_v15 = vpack.i.bf16 %v2435_v13, %v2430_v12  ;;  %v2112_v17 = vpack.i.bf16 %v2447_v16, %v2440_v14  ;;  %v2454_v18 = vld [vmem:[%s2956_s4] sm:$0xff]  ;;  %v316_v22 = vld [vmem:[%s2957_s5 + $0x8] sm:$0xff]  ;;  %v2472_v26 = vld [vmem:[%s2956_s4 + $0x30] sm:$0xff]  ;;  %vm674_vm3 = vcmask 523264  }
   0xe   : > { %v2372_v0 = vld [vmem:[%s286_s26 + $0x18] sm:$0xff]  ;;  %v2374_v1 = vld [vmem:[%s286_s26 + $0x10] sm:$0xff]  ;;  %v2376_v2 = vld [vmem:[%s286_s26 + $0x8] sm:$0xff]  ;;  %s281_s7 = scalar_lea.vmem %s2953_s1, %s2085_s27  ;;  %v2132_v21 = vpack.i.bf16 %v2459_v19, %v2454_v18 }
   0xf   : > { %401 = vrot.lane.b32.xlu0 %v2372_v0, %s2310_s28  ;;  %336 = vmatpush.msra.mxu0 %v2372_v0  ;;  %v2386_v3 = vld [vmem:[%s281_s7 + $0x8] sm:$0xff]  ;;  %v2390_v4 = vld [vmem:[%s286_s26] sm:$0xff]  ;;  %s2414_s13 = scalar_lea.vmem %s2952_s0, %s2084_s10  ;;  %v2424_v11 = vld [vmem:[%s281_s7 + $0x10] sm:$0xff]  ;;  %s2831_s25 = scalar_lea.vmem %s2958_s6, %s2084_s10 }
  0x10   : > { %397 = vrot.lane.b32.xlu1 %v2376_v2, %s2310_s28  ;;  %376 = vmatpush.msra.mxu1 %v2386_v3  ;;  %v2392_v5 = vld [vmem:[%s281_s7] sm:$0xff]  ;;  %v294_v7 = vld [vmem:[%s2414_s13 + $0x10] sm:$0xff]  ;;  %v295_v8 = vld [vmem:[%s2414_s13 + $0x18] sm:$0xff] }
  0x11   : > { %337 = vmatpush.msra.mxu0 %v2374_v1  ;;  %v296_v9 = vld [vmem:[%s2414_s13 + $0x20] sm:$0xff]  ;;  %v297_v10 = vld [vmem:[%s2414_s13 + $0x28] sm:$0xff]  ;;  %427 = vmatpush.msra.mxu2 %v2424_v11  ;;  %v2477_v27 = vld [vmem:[%s2956_s4 + $0x38] sm:$0xff] }
  0x12   : > { %377 = vmatpush.msra.mxu1 %v2392_v5  ;;  %2118 = vrot.lane.b32.xlu2 %v2117_v15, %s2311_s24  ;;  %v315_v20 = vld [vmem:[%s2957_s5] sm:$0xff]  ;;  %v2147_v28 = vpack.i.bf16 %v2477_v27, %v2472_v26  ;;  %v293_v34 = vld [vmem:[%s2414_s13 + $0x8] sm:$0xff]  ;;  %v298_v43 = vld [vmem:[%s2414_s13 + $0x30] sm:$0xff] }
  0x13   : > { %338 = vmatpush.msra.mxu0 %v2376_v2  ;;  %v2127_v23 = vpack.i.bf16 %v316_v22, %v315_v20  ;;  %v292_v32 = vld [vmem:[%s2414_s13] sm:$0xff]  ;;  %2019 = vmatmul.msk.f32.vlgmr.msra.gmra.mxu1 %vm349_vm2, %v2390_v4  ;;  %s2318_s13 = smov 125  }
  0x15   : > { %339 = vmatpush.msra.mxu0 %v2390_v4 }
  0x16   : > { %2017 = vmatmul.msk.f32.vlgmr.msra.gmra.mxu0 %vm317_vm0, %v2392_v5 }
  0x17   : > { %399 = vrot.lane.b32.xlu0 %v2374_v1, %s2310_s28  ;;  %529 = vmatpush.msrb.mxu0 %v306_v6 }
  0x18   : > { %395 = vrot.lane.b32.xlu1 %v2390_v4, %s2310_s28 }
  0x19   : > { %728 = vmatpush.msra.mxu0 %v316_v22 }
  0x1a   : > { %2133 = vrot.lane.b32.xlu2 %v2132_v21, %s2312_s11 }
  0x1b   : > { %729 = vmatpush.msra.mxu0 %v315_v20  ;;  %2020 = vmatmul.msk.f32.gmra.mxu1 %vm349_vm2, %v2376_v2 }
  0x1e   : > { %2018 = vmatmul.msk.f32.gmra.mxu0 %vm317_vm0, %v2386_v3 }
  0x1f   : > { %2108 = vrot.lane.b32.xlu0 %v2132_v21, %s2311_s24 }
  0x20   : > { %2113 = vrot.lane.b32.xlu1 %v2112_v17, %s2311_s24 }
  0x22   : > { %2148 = vrot.lane.b32.xlu2 %v2147_v28, %s2312_s11 }
  0x23   : > { %2021 = vmatmul.msk.f32.gmra.mxu1 %vm349_vm2, %v2374_v1 }
  0x26   : > { %2030 = vmatmul.msk.f32.vlgmr.msrb.gmra.mxu0 %vm403_vm1, %v294_v7 }
  0x27   : > { %2123 = vrot.lane.b32.xlu0 %v2147_v28, %s2311_s24 }
  0x28   : > { %2128 = vrot.lane.b32.xlu1 %v2127_v23, %s2313_s12 }
  0x2b   : > { %2022 = vmatmul.msk.f32.gmra.mxu1 %vm349_vm2, %v2372_v0 }
  0x2e   : > { %2031 = vmatmul.msk.f32.gmra.mxu0 %vm403_vm1, %v295_v8 }
  0x2f   : > { %2138 = vrot.lane.b32.xlu0 %v2112_v17, %s2312_s11 }
  0x30   : > { %2143 = vrot.lane.b32.xlu1 %v2117_v15, %s2312_s11 }
  0x36   : > { %2032 = vmatmul.msk.f32.gmra.mxu0 %vm403_vm1, %v296_v9 }
  0x3e   : > { %2033 = vmatmul.msk.f32.gmra.mxu0 %vm403_vm1, %v297_v10 }
  0x6c   : > { %v2119_v41 = vpop.permute.xlu2 %2118 }
  0x6d   : > { %v2120_v7 = vunpack.i.l.bf16 %v2119_v41 }
  0x74   : > { %v2511_v42 = vpop.permute.xlu2 %2133 }
  0x75   : > { %v2135_v22 = vunpack.i.l.bf16 %v2511_v42 }
  0x7c   : > { %v2517_v45 = vpop.permute.xlu2 %2148 }
  0x81   : > { %v402_v24 = vpop.permute.xlu0 %401 }
  0x82   : > { %v398_v25 = vpop.permute.xlu1 %397  ;;  %464 = vmatpush.msra.mxu3 %v402_v24 }
  0x89   : > { %v400_v29 = vpop.permute.xlu0 %399 }
  0x8a   : > { %465 = vmatpush.msra.mxu3 %v400_v29  ;;  %v396_v30 = vpop.permute.xlu1 %395 }
  0x8b   : > { %2023 = vmatmul.msk.f32.vlgmr.msra.gmra.mxu2 %vm403_vm1, %v396_v30 }
  0x8c   : > { %466 = vmatpush.msra.mxu3 %v398_v25 }
  0x8e   : > { %467 = vmatpush.msra.mxu3 %v396_v30 }
  0x8f   : > { %2027 = vmatmul.msk.f32.vlgmr.msra.gmra.mxu3 %vm317_vm0, %v2424_v11 }
  0x90   : > { %494 = vmatpush.msrb.mxu3 %v306_v6 }
  0x91   : > { %v2109_v49 = vpop.permute.xlu0 %2108 }
  0x92   : > { %561 = vmatpush.msra.mxu3 %v306_v6  ;;  %v2114_v44 = vpop.permute.xlu1 %2113  ;;  %v2121_v6 = vunpack.i.h.bf16 %v2119_v41  ;;  %v2111_v15 = vunpack.i.h.bf16 %v2109_v49  ;;  %v2110_v20 = vunpack.i.l.bf16 %v2109_v49 }
  0x93   : > { %v2484_v31 = vpop.f32.mrf.mxu0  ;;  %2024 = vmatmul.msk.f32.gmra.mxu2 %vm403_vm1, %v398_v25  ;;  %v2116_v8 = vunpack.i.h.bf16 %v2114_v44  ;;  %v2115_v9 = vunpack.i.l.bf16 %v2114_v44 }
  0x94   : > { %vm347_vm6 = vcmp.ne.f32.partialorder %v2484_v31, 0.0 }
  0x97   : > { %2028 = vmatmul.msk.f32.vlgmr.msrb.gmra.mxu3 %vm403_vm1, %v292_v32 }
  0x99   : > { %v2124_v55 = vpop.permute.xlu0 %2123 }
  0x9a   : > { %v2521_v46 = vpop.permute.xlu1 %2128  ;;  %v2126_v61 = vunpack.i.h.bf16 %v2124_v55  ;;  %v2125_v63 = vunpack.i.l.bf16 %v2124_v55 }
  0x9b   : > { %v2489_v33 = vpop.f32.mrf.mxu0  ;;  %2025 = vmatmul.msk.f32.gmra.mxu2 %vm403_vm1, %v400_v29  ;;  %v2130_v28 = vunpack.i.l.bf16 %v2521_v46  ;;  %v2582_v29 = vpop.f32.mrf.mxu1 }
  0x9c   : > { %vm348_vm7 = vcmp.ne.f32.partialorder %v2489_v33, 0.0  ;;  %vm391_vm15 = vcmp.ne.f32.partialorder %v2582_v29, 0.0 }
  0x9f   : > { %2029 = vmatmul.msk.f32.gmra.mxu3 %vm403_vm1, %v293_v34  ;;  %v2315_v34 = vmov 2  }
  0xa0   : > { %2178 = vset.pattern.permute.xlu1 %v2315_v34 }
  0xa1   : > { %v2139_v62 = vpop.permute.xlu0 %2138 }
  0xa2   : > { %v2527_v50 = vpop.permute.xlu1 %2143 }
  0xa3   : > { %v2494_v35 = vpop.f32.mrf.mxu0  ;;  %2026 = vmatmul.msk.f32.gmra.mxu2 %vm403_vm1, %v402_v24  ;;  %v2586_v30 = vpop.f32.mrf.mxu1 }
  0xa7   : > { %2034 = vmatmul.msk.f32.vlgmr.msra.gmra.mxu3 %vm403_vm1, %v298_v43 }
  0xab   : > { %v2497_v36 = vpop.f32.mrf.mxu0  ;;  %v2590_v32 = vpop.f32.mrf.mxu1 }
  0xac   : > { %v2157_v37 = vpack.i.bf16 %v2497_v36, %v2494_v35 }
  0xae   : > { %2158 = vrot.lane.b32.xlu1 %v2157_v37, %s2310_s28  ;;  %2153 = vrot.lane.b32.xlu2 %v2157_v37, %s2314_s18  ;;  %v2316_v37 = vmov 0  }
  0xaf   : > { %2177 = vset.pattern.permute.xlu0 %v2316_v37 }
  0xb3   : > { %v2502_v38 = vpop.f32.mrf.mxu0 }
  0xbb   : > { %v2504_v39 = vpop.f32.mrf.mxu0 }
  0xbc   : > { %v2167_v40 = vpack.i.bf16 %v2504_v39, %v2502_v38 }
  0xbe   : > { %2168 = vrot.lane.b32.xlu2 %v2167_v40, %s2310_s28  ;;  %2163 = vrot.lane.b32.xlu0 %v2167_v40, %s2314_s18 }
 0x108   : > { %v2154_v47 = vpop.permute.xlu2 %2153 }
 0x109   : > { %v2156_v21 = vunpack.i.h.bf16 %v2154_v47 }
 0x112   : > { %v2523_v48 = vpop.f32.mrf.mxu3 }
 0x113   : > { %vm472_vm11 = vcmp.ne.f32.partialorder %v2523_v48, 0.0 }
 0x118   : > { %v2169_v51 = vpop.permute.xlu2 %2168 }
 0x119   : > { %v2171_v52 = vunpack.i.h.bf16 %v2169_v51  ;;  %v2170_v54 = vunpack.i.l.bf16 %v2169_v51 }
 0x11a   : > { %v2529_v53 = vpop.f32.mrf.mxu3 }
 0x11b   : > { %663 = vmatpush.msrb.mxu3 %v2171_v52 }
 0x11d   : > { %664 = vmatpush.msrb.mxu3 %v2170_v54 }
 0x120   : > { %v2159_v56 = vpop.permute.xlu1 %2158 }
 0x121   : > { %v2161_v57 = vunpack.i.h.bf16 %v2159_v56  ;;  %v2160_v59 = vunpack.i.l.bf16 %v2159_v56 }
 0x122   : > { %v2531_v58 = vpop.f32.mrf.mxu3 }
 0x123   : > { %v2172_v60 = vpack.i.bf16 %v2531_v58, %v2529_v53  ;;  %665 = vmatpush.msrb.mxu3 %v2161_v57 }
 0x125   : > { %666 = vmatpush.msrb.mxu3 %v2160_v59  ;;  %2173 = vrot.lane.b32.xlu2 %v2172_v60, %s2310_s28  ;;  %s2317_s28 = smov 127  }
 0x126   : > { %2040 = vmatmul.msk.f32.vlgmr.msrb.gmra.mxu3 %vm317_vm0, %v2392_v5 }
 0x127   : > { %791 = vmatpush.msra.mxu3 %v2126_v61 }
 0x129   : > { %792 = vmatpush.msra.mxu3 %v2125_v63  ;;  %v2319_v63 = vmov 4  }
 0x12b   : > { %793 = vmatpush.msra.mxu3 %v2121_v6 }
 0x12d   : > { %794 = vmatpush.msra.mxu3 %v2120_v7 }
 0x12e   : > { %2041 = vmatmul.msk.f32.gmra.mxu3 %vm317_vm0, %v2386_v3  ;;  %v2155_v3 = vunpack.i.l.bf16 %v2154_v47 }
 0x12f   : > { %795 = vmatpush.msra.mxu3 %v2116_v8 }
 0x130   : > { %v2164_v10 = vpop.permute.xlu0 %2163 }
 0x131   : > { %796 = vmatpush.msra.mxu3 %v2115_v9  ;;  %v2166_v17 = vunpack.i.h.bf16 %v2164_v10  ;;  %v2165_v5 = vunpack.i.l.bf16 %v2164_v10 }
 0x133   : > { %797 = vmatpush.msra.mxu3 %v2111_v15  ;;  %631 = vmatpush.msrb.mxu1 %v2166_v17 }
 0x135   : > { %798 = vmatpush.msra.mxu3 %v2110_v20  ;;  %632 = vmatpush.msrb.mxu1 %v2165_v5 }
 0x136   : > { %2048 = vmatmul.msk.f32.vlgmr.msra.gmra.mxu3 %vm674_vm3, %v2494_v35 }
 0x137   : > { %1705 = vmatpush.msrb.mxu3 %v2504_v39  ;;  %633 = vmatpush.msrb.mxu1 %v2156_v21 }
 0x139   : > { %1706 = vmatpush.msrb.mxu3 %v2502_v38  ;;  %634 = vmatpush.msrb.mxu1 %v2155_v3 }
 0x13a   : > { %2039 = vmatmul.msk.f32.vlgmr.msrb.gmra.mxu1 %vm317_vm0, %v2424_v11  ;;  %v2151_v11 = vunpack.i.h.bf16 %v2517_v45 }
 0x13b   : > { %1707 = vmatpush.msrb.mxu3 %v2497_v36  ;;  %687 = vmatpush.msra.mxu1 %v2477_v27  ;;  %v2131_v27 = vunpack.i.h.bf16 %v2521_v46 }
 0x13d   : > { %1708 = vmatpush.msrb.mxu3 %v2494_v35  ;;  %688 = vmatpush.msra.mxu1 %v2472_v26  ;;  %v2572_v26 = vpop.f32.mrf.mxu3 }
 0x13e   : > { %2049 = vmatmul.msk.f32.gmra.mxu3 %vm674_vm3, %v2497_v36 }
 0x13f   : > { %689 = vmatpush.msra.mxu1 %v2435_v13  ;;  %v2150_v13 = vunpack.i.l.bf16 %v2517_v45 }
 0x141   : > { %690 = vmatpush.msra.mxu1 %v2430_v12  ;;  %v2146_v12 = vunpack.i.h.bf16 %v2527_v50 }
 0x143   : > { %691 = vmatpush.msra.mxu1 %v2447_v16  ;;  %v2145_v16 = vunpack.i.l.bf16 %v2527_v50 }
 0x145   : > { %692 = vmatpush.msra.mxu1 %v2440_v14  ;;  %v2141_v14 = vunpack.i.h.bf16 %v2139_v62 }
 0x146   : > { %2050 = vmatmul.msk.f32.gmra.mxu3 %vm674_vm3, %v2502_v38 }
 0x147   : > { %693 = vmatpush.msra.mxu1 %v2459_v19  ;;  %v2136_v19 = vunpack.i.h.bf16 %v2511_v42  ;;  %v2608_v42 = vpop.f32.mrf.mxu2 }
 0x149   : > { %694 = vmatpush.msra.mxu1 %v2454_v18  ;;  %v2140_v18 = vunpack.i.l.bf16 %v2139_v62 }
 0x14a   : > { %2042 = vmatmul.msk.f32.vlgmr.msra.gmra.mxu1 %vm674_vm3, %v2529_v53 }
 0x14b   : > { %878 = vmatpush.msrb.mxu1 %v2151_v11 }
 0x14d   : > { %879 = vmatpush.msrb.mxu1 %v2150_v13 }
 0x14e   : > { %2051 = vmatmul.msk.f32.gmra.mxu3 %vm674_vm3, %v2504_v39 }
 0x14f   : > { %880 = vmatpush.msrb.mxu1 %v2146_v12  ;;  %v2610_v43 = vpop.f32.mrf.mxu2 }
 0x151   : > { %881 = vmatpush.msrb.mxu1 %v2145_v16 }
 0x152   : > { %2043 = vmatmul.msk.f32.gmra.mxu1 %vm674_vm3, %v2531_v58 }
 0x153   : > { %882 = vmatpush.msrb.mxu1 %v2141_v14 }
 0x155   : > { %883 = vmatpush.msrb.mxu1 %v2140_v18 }
 0x157   : > { %884 = vmatpush.msrb.mxu1 %v2136_v19  ;;  %v2612_v44 = vpop.f32.mrf.mxu2 }
 0x159   : > { %885 = vmatpush.msrb.mxu1 %v2135_v22 }
 0x15a   : > { %2053 = vmatmul.msk.f32.vlgmr.msrb.gmra.mxu1 %vm674_vm3, %v2572_v26 }
 0x15f   : > { %v2614_v45 = vpop.f32.mrf.mxu2 }
 0x17f   : > { %v2174_v23 = vpop.permute.xlu2 %2173 }
 0x180   : > { %v2176_v24 = vunpack.i.h.bf16 %v2174_v23  ;;  %v2175_v25 = vunpack.i.l.bf16 %v2174_v23 }
 0x182   : > { %588 = vmatpush.msrb.mxu2 %v2176_v24 }
 0x184   : > { %589 = vmatpush.msrb.mxu2 %v2175_v25 }
 0x185   : > { %2035 = vmatmul.msk.f32.vlgmr.msrb.gmra.mxu2 %vm349_vm2, %v2390_v4 }
 0x186   : > { %837 = vmatpush.msra.mxu2 %v2131_v27 }
 0x188   : > { %838 = vmatpush.msra.mxu2 %v2130_v28 }
 0x18d   : > { %2036 = vmatmul.msk.f32.gmra.mxu2 %vm349_vm2, %v2376_v2  ;;  %v2594_v2 = vpop.f32.mrf.mxu1 }
 0x195   : > { %2037 = vmatmul.msk.f32.gmra.mxu2 %vm349_vm2, %v2374_v1 }
 0x19d   : > { %2038 = vmatmul.msk.f32.gmra.mxu2 %vm349_vm2, %v2372_v0 }
 0x1a9   : > { %v668_v4 = vpop.f32.mrf.mxu3 }
 0x1b1   : > { %v671_v40 = vpop.f32.mrf.mxu3 }
 0x1b2   : > { %1562 = vmatpush.msra.mxu1 %v671_v40  ;;  %2082 = vmatpush.msrb.mxu2 %v671_v40 }
 0x1b4   : > { %1563 = vmatpush.msra.mxu1 %v668_v4  ;;  %2083 = vmatpush.msrb.mxu2 %v668_v4 }
 0x1b6   : > { %1591 = vmatpush.msrb.mxu1 %v2531_v58 }
 0x1b7   : > { %v2597_v1 = vpop.f32.mrf.mxu1 }
 0x1b8   : > { %1592 = vmatpush.msrb.mxu1 %v2529_v53  ;;  %2052 = vmatmul.msk.f32.vlgmr.msra.gmra.mxu2 %vm349_vm2, %v2597_v1 }
 0x1b9   : > { %v800_v62 = vpop.f32.mrf.mxu3 }
 0x1c1   : > { %v803_v8 = vpop.f32.mrf.mxu3 }
 0x1c7   : > { %v696_v0 = vpop.f32.mrf.mxu1 }
 0x1c8   : > { %1010 = vperm.xlu1 %2178, %v696_v0   ;;  %892 = vrot.lane.b32.xlu0 %v696_v0, %s2317_s28 }
 0x1c9   : > { %v806_v15 = vpop.f32.mrf.mxu3 }
 0x1cf   : > { %v699_v41 = vpop.f32.mrf.mxu1 }
 0x1d0   : > { %931 = vperm.xlu0 %2177, %v696_v0   ;;  %894 = vrot.lane.b32.xlu1 %v699_v41, %s2317_s28 }
 0x1d1   : > { %2179 = vset.pattern.permute.xlu1 %v2316_v37 }
 0x1d7   : > { %v887_v51 = vpop.f32.mrf.mxu1 }
 0x1d8   : > { %971 = vrot.lane.b32.xlu0 %v696_v0, %s2318_s13  ;;  %935 = vperm.xlu1 %2179, %v699_v41  }
 0x1e0   : > { %973 = vrot.lane.b32.xlu1 %v699_v41, %s2318_s13 }
 0x1e1   : > { %2180 = vset.pattern.permute.xlu1 %v2315_v34 }
 0x1e8   : > { %1014 = vperm.xlu1 %2180, %v699_v41  }
 0x208   : > { %v591_v46 = vpop.f32.mrf.mxu2 }
 0x209   : > { %2044 = vmatmul.msk.f32.vlgmr.msra.gmra.mxu0 %vm349_vm2, %v591_v46 }
 0x210   : > { %v594_v47 = vpop.f32.mrf.mxu2 }
 0x211   : > { %2045 = vmatmul.msk.f32.gmra.mxu0 %vm349_vm2, %v594_v47 }
 0x218   : > { %v597_v49 = vpop.f32.mrf.mxu2 }
 0x219   : > { %2046 = vmatmul.msk.f32.gmra.mxu0 %vm349_vm2, %v597_v49 }
 0x220   : > { %v600_v50 = vpop.f32.mrf.mxu2 }
 0x221   : > { %2047 = vmatmul.msk.f32.gmra.mxu0 %vm349_vm2, %v600_v50 }
 0x222   : > { %1664 = vmatpush.msrb.mxu0 %v600_v50 }
 0x224   : > { %1665 = vmatpush.msrb.mxu0 %v597_v49 }
 0x226   : > { %1666 = vmatpush.msrb.mxu0 %v594_v47 }
 0x228   : > { %1667 = vmatpush.msrb.mxu0 %v591_v46 }
 0x23a   : > { %v1011_v52 = vpop.permute.xlu1 %1010  ;;  %v893_v53 = vpop.permute.xlu0 %892 }
 0x23b   : > { %898 = vxpose.xlu2.b32.start [1/2] (short) (narrow) %v893_v53, 8  ;;  %v840_v54 = vpop.f32.mrf.mxu2 }
 0x23c   : > { %v888_v55 = vadd.f32 %v887_v51, %v840_v54 }
 0x23e   : > { %1486 = vrot.lane.b32.xlu1 %v888_v55, %s2318_s13 }
 0x242   : > { %v932_v56 = vpop.permute.xlu0 %931  ;;  %v895_v57 = vpop.permute.xlu1 %894 }
 0x243   : > { %899 = vxpose.xlu2.b32.end [2/2] (short) (narrow) %v895_v57, 8 }
 0x246   : > { %1430 = vrot.lane.b32.xlu1 %v888_v55, %s2317_s28 }
 0x24a   : > { %v972_v58 = vpop.permute.xlu0 %971  ;;  %v936_v59 = vpop.permute.xlu1 %935 }
 0x24b   : > { %977 = vxpose.xlu0.b32.start [1/2] (short) (narrow) %v972_v58, 8 }
 0x24e   : > { %1522 = vperm.xlu1 %2180, %v888_v55  }
 0x252   : > { %v974_v60 = vpop.permute.xlu1 %973 }
 0x253   : > { %978 = vxpose.xlu0.b32.end [2/2] (short) (narrow) %v974_v60, 8 }
 0x256   : > { %2181 = vset.pattern.permute.xlu1 %v2316_v37 }
 0x257   : > { %1466 = vperm.xlu1 %2181, %v888_v55  }
 0x25a   : > { %v1015_v25 = vpop.permute.xlu1 %1014 }
 0x286   : > { %v731_v61 = vpop.f32.mrf.mxu0 }
 0x287   : > { %v801_v6 = vadd.f32 %v800_v62, %v731_v61 }
 0x28e   : > { %v734_v7 = vpop.f32.mrf.mxu0 }
 0x28f   : > { %v804_v9 = vadd.f32 %v803_v8, %v734_v7 }
 0x296   : > { %v737_v10 = vpop.f32.mrf.mxu0 }
 0x297   : > { %v2625_v17 = vadd.f32 %v806_v15, %v737_v10 }
 0x29e   : > { %v740_v15 = vpop.f32.mrf.mxu0 }
 0x2a5   : > { %2185 = vset.pattern.permute.xlu2 %v2319_v63 }
 0x2ac   : > { %1054 = vrot.lane.b32.xlu2 %v801_v6, %s2317_s28 }
 0x2b0   : > { %v1487_v31 = vpop.permute.xlu1 %1486 }
 0x2b4   : > { %1353 = vperm.xlu2 %2185, %v804_v9  }
 0x2b8   : > { %v1431_v33 = vpop.permute.xlu1 %1430 }
 0x2ba   : > { %2186 = vset.pattern.permute.xlu0 %v2315_v34 }
 0x2bc   : > { %1058 = vrot.lane.b32.xlu2 %v2625_v17, %s2317_s28 }
 0x2c0   : > { %v1523_v51 = vpop.permute.xlu1 %1522 }
 0x2d4   : > { %v914_v20 = vpop.trf.xlu2 }
 0x2d5   : > { %v938_v5 = vperm.slane %v914_v20, 0 }
 0x2d7   : > { %v939_v21 = vadd.f32 %v938_v5, %v932_v56  ;;  %v940_v3 = vadd.f32 %v938_v5, %v936_v59 }
 0x2d9   : > { %vm942_vm4 = vcmp.gt.f32.partialorder %v940_v3, 0.0  ;;  %v944_v11 = vmul.f32 0.2, %v940_v3  ;;  %vm941_vm5 = vcmp.gt.f32.partialorder %v939_v21, 0.0  ;;  %v943_v13 = vmul.f32 0.2, %v939_v21 }
 0x2db   : > { %v946_v12 = vsel %vm942_vm4, %v940_v3, %v944_v11  ;;  %v945_v16 = vsel %vm941_vm5, %v939_v21, %v943_v13  ;;  %vm392_vm4 = vcmp.ne.f32.partialorder %v2586_v30, 0.0 }
 0x2dc   : > { %v2634_v14 = vsel %vm348_vm7, %v946_v12, -9e+15  ;;  %v947_v18 = vsel %vm347_vm6, %v945_v16, -9e+15 }
 0x2dd   : > { %v952_v19 = vsel %vm349_vm2, %v2634_v14, -inf  ;;  %v949_v22 = vsel %vm349_vm2, %v947_v18, -inf }
 0x2de   : > { %953 = vmax.xlane.f32.xlu0 %v952_v19  ;;  %950 = vmax.xlane.f32.xlu1 %v949_v22 }
 0x2ef   : > { %v993_v23 = vpop.trf.xlu0 }
 0x2f0   : > { %v1017_v24 = vperm.slane %v993_v23, 0 }
 0x2f2   : > { %v1018_v27 = vadd.f32 %v1017_v24, %v1011_v52  ;;  %v1019_v28 = vadd.f32 %v1017_v24, %v1015_v25  ;;  %v2662_v52 = vpop.permute.xlu1 %1466 }
 0x2f4   : > { %vm1021_vm8 = vcmp.gt.f32.partialorder %v1019_v28, 0.0  ;;  %v1023_v4 = vmul.f32 0.2, %v1019_v28  ;;  %vm1020_vm9 = vcmp.gt.f32.partialorder %v1018_v27, 0.0  ;;  %v1022_v40 = vmul.f32 0.2, %v1018_v27 }
 0x2f6   : > { %v1025_v0 = vsel %vm1021_vm8, %v1019_v28, %v1023_v4  ;;  %v1024_v41 = vsel %vm1020_vm9, %v1018_v27, %v1022_v40 }
 0x2f7   : > { %v2643_v46 = vsel %vm348_vm7, %v1025_v0, -9e+15  ;;  %v2647_v47 = vsel %vm347_vm6, %v1024_v41, -9e+15  ;;  %vm394_vm6 = vcmp.ne.f32.partialorder %v2594_v2, 0.0  ;;  %vm393_vm7 = vcmp.ne.f32.partialorder %v2590_v32, 0.0 }
 0x2f8   : > { %v1031_v49 = vsel %vm349_vm2, %v2643_v46, -inf  ;;  %v1028_v50 = vsel %vm349_vm2, %v2647_v47, -inf }
 0x2f9   : > { %1032 = vmax.xlane.f32.xlu0 %v1031_v49  ;;  %1029 = vmax.xlane.f32.xlu1 %v1028_v50 }
 0x306   : > { %v1055_v60 = vpop.permute.xlu2 %1054 }
 0x30d   : > { %1181 = vrot.lane.b32.xlu0 %v804_v9, %s2318_s13 }
 0x30e   : > { %v2686_v8 = vpop.permute.xlu2 %1353 }
 0x312   : > { %1099 = vperm.xlu1 %2181, %v801_v6  }
 0x315   : > { %1228 = vperm.xlu0 %2186, %v804_v9  }
 0x316   : > { %v1059_v10 = vpop.permute.xlu2 %1058 }
 0x31a   : > { %1179 = vrot.lane.b32.xlu1 %v801_v6, %s2318_s13 }
 0x31b   : > { %2182 = vset.pattern.permute.xlu1 %v2315_v34 }
 0x31d   : > { %1183 = vrot.lane.b32.xlu0 %v2625_v17, %s2318_s13 }
 0x322   : > { %1224 = vperm.xlu1 %2182, %v801_v6  }
 0x32a   : > { %1304 = vrot.lane.b32.xlu1 %v801_v6, %s2320_s19 }
 0x32b   : > { %2183 = vset.pattern.permute.xlu1 %v2319_v63 }
 0x332   : > { %1349 = vperm.xlu1 %2183, %v801_v6  }
 0x33a   : > { %1056 = vrot.lane.b32.xlu1 %v804_v9, %s2317_s28 }
 0x33b   : > { %2184 = vset.pattern.permute.xlu1 %v2316_v37 }
 0x342   : > { %1103 = vperm.xlu1 %2184, %v804_v9  }
 0x34a   : > { %1306 = vrot.lane.b32.xlu1 %v804_v9, %s2320_s19 }
 0x351   : > { %v951_v53 = vpop.xlane.xlu1 %950  ;;  %v954_v12 = vpop.xlane.xlu0 %953 }
 0x352   : > { %v955_v54 = vsub.f32 %v947_v18, %v951_v53  ;;  %1107 = vperm.xlu1 %2184, %v2625_v17   ;;  %v956_v16 = vsub.f32 %v2634_v14, %v954_v12 }
 0x354   : > { %v957_v55 = vmul.f32 1.442695, %v955_v54 }
 0x356   : > { %2202 = vpow2.f32 %v957_v55 }
 0x35a   : > { %1308 = vrot.lane.b32.xlu1 %v2625_v17, %s2320_s19 }
 0x35b   : > { %2187 = vset.pattern.permute.xlu1 %v2319_v63 }
 0x35c   : > { %v2669_v56 = vpop.eup %2202 }
 0x35d   : > { %v961_v57 = vsel %vm349_vm2, %v2669_v56, 0.0 }
 0x35e   : > { %962 = vadd.xlane.f32.xlu2 %v961_v57 }
 0x362   : > { %1357 = vperm.xlu1 %2187, %v2625_v17  }
 0x36a   : > { %2188 = vset.pattern.permute.xlu1 %v2315_v34 }
 0x36b   : > { %1232 = vperm.xlu1 %2188, %v2625_v17   ;;  %v809_v17 = vpop.f32.mrf.mxu3 }
 0x36c   : > { %v1030_v58 = vpop.xlane.xlu1 %1029  ;;  %v810_v20 = vadd.f32 %v809_v17, %v740_v15  ;;  %v1033_v0 = vpop.xlane.xlu0 %1032 }
 0x36d   : > { %v1034_v24 = vsub.f32 %v2647_v47, %v1030_v58  ;;  %v1035_v47 = vsub.f32 %v2643_v46, %v1033_v0 }
 0x36f   : > { %v1036_v4 = vmul.f32 1.442695, %v1034_v24 }
 0x37f   : > { %v1182_v46 = vpop.permute.xlu0 %1181 }
 0x384   : > { %v2676_v59 = vpop.permute.xlu1 %1099 }
 0x387   : > { %1066 = vxpose.xlu2.b32.start [1/4] (short) (narrow) %v1055_v60, 8  ;;  %v2721_v58 = vpop.permute.xlu0 %1228 }
 0x38c   : > { %v2678_v61 = vpop.permute.xlu1 %1179 }
 0x38f   : > { %v1184_v60 = vpop.permute.xlu0 %1183 }
 0x394   : > { %v2680_v62 = vpop.permute.xlu1 %1224 }
 0x39c   : > { %v2682_v6 = vpop.permute.xlu1 %1304 }
 0x3a0   : > { %1489 = vxpose.xlu1.b32.start.end [1/1] (short) (narrow) %v1487_v31, 8 }
 0x3a4   : > { %v2684_v7 = vpop.permute.xlu1 %1349 }
 0x3a8   : > { %1433 = vxpose.xlu1.b32.start.end [1/1] (short) (narrow) %v1431_v33, 8 }
 0x3ac   : > { %v1057_v9 = vpop.permute.xlu1 %1056 }
 0x3ad   : > { %1067 = vxpose.xlu2.b32.cont [2/4] (short) (narrow) %v1057_v9, 8 }
 0x3b4   : > { %v2690_v5 = vpop.permute.xlu1 %1103 }
 0x3b5   : > { %1068 = vxpose.xlu2.b32.cont [3/4] (short) (narrow) %v1059_v10, 8 }
 0x3bc   : > { %v1307_v21 = vpop.permute.xlu1 %1306 }
 0x3c4   : > { %v2695_v3 = vpop.permute.xlu1 %1107 }
 0x3cc   : > { %v1309_v11 = vpop.permute.xlu1 %1308 }
 0x3d1   : > { %v963_v12 = vpop.xlane.xlu2 %962 }
 0x3fb   : > { %2189 = vset.pattern.permute.xlu1 %v2316_v37  ;;  %v2698_v37 = vpop.permute.xlu1 %1357 }
 0x402   : > { %1060 = vrot.lane.b32.xlu1 %v810_v20, %s2317_s28 }
 0x403   : > { %v2700_v13 = vpop.permute.xlu1 %1232 }
 0x40a   : > { %1111 = vperm.xlu1 %2189, %v810_v20  }
 0x412   : > { %1185 = vrot.lane.b32.xlu1 %v810_v20, %s2318_s13 }
 0x413   : > { %2190 = vset.pattern.permute.xlu1 %v2319_v63  ;;  %v959_v63 = vmul.f32 1.442695, %v956_v16 }
 0x415   : > { %2204 = vpow2.f32 %v959_v63 }
 0x416   : > { %2206 = vpow2.f32 %v1036_v4 }
 0x41a   : > { %1310 = vrot.lane.b32.xlu1 %v810_v20, %s2320_s19 }
 0x41b   : > { %v2205_v41 = vpop.eup %2204 }
 0x41c   : > { %v964_v31 = vsel %vm349_vm2, %v2205_v41, 0.0  ;;  %v2207_v53 = vpop.eup %2206 }
 0x422   : > { %1361 = vperm.xlu1 %2190, %v810_v20  }
 0x42a   : > { %2191 = vset.pattern.permute.xlu1 %v2315_v34 }
 0x42b   : > { %1236 = vperm.xlu1 %2191, %v810_v20  }
 0x444   : > { %v1505_v18 = vpop.trf.xlu1 }
 0x445   : > { %v1525_v19 = vperm.slane %v1505_v18, 0 }
 0x447   : > { %v1526_v22 = vadd.f32 %v1525_v19, %v1523_v51  ;;  %v1038_v51 = vmul.f32 1.442695, %v1035_v47 }
 0x449   : > { %vm1527_vm10 = vcmp.gt.f32.partialorder %v1526_v22, 0.0  ;;  %v1528_v23 = vmul.f32 0.2, %v1526_v22  ;;  %2208 = vpow2.f32 %v1038_v51 }
 0x44b   : > { %v1529_v34 = vsel %vm1527_vm10, %v1526_v22, %v1528_v23  ;;  %vm441_vm10 = vcmp.ne.f32.partialorder %v2608_v42, 0.0 }
 0x44c   : > { %v1449_v25 = vpop.trf.xlu1  ;;  %v2707_v27 = vsel %vm472_vm11, %v1529_v34, -9e+15 }
 0x44d   : > { %v1469_v28 = vperm.slane %v1449_v25, 0  ;;  %v1531_v14 = vsel %vm403_vm1, %v2707_v27, -inf }
 0x44e   : > { %1532 = vmax.xlane.f32.xlu0 %v1531_v14 }
 0x44f   : > { %v1470_v40 = vadd.f32 %v1469_v28, %v2662_v52  ;;  %v1040_v52 = vsel %vm349_vm2, %v2207_v53, 0.0  ;;  %v2209_v54 = vpop.eup %2208 }
 0x450   : > { %v1043_v55 = vsel %vm349_vm2, %v2209_v54, 0.0 }
 0x451   : > { %vm1471_vm12 = vcmp.gt.f32.partialorder %v1470_v40, 0.0  ;;  %v1472_v49 = vmul.f32 0.2, %v1470_v40 }
 0x453   : > { %v1473_v50 = vsel %vm1471_vm12, %v1470_v40, %v1472_v49 }
 0x454   : > { %v2716_v33 = vsel %vm472_vm11, %v1473_v50, -9e+15  ;;  %vm442_vm11 = vcmp.ne.f32.partialorder %v2610_v43, 0.0 }
 0x455   : > { %965 = vadd.xlane.f32.xlu1 %v964_v31 }
 0x45d   : > { %1041 = vadd.xlane.f32.xlu1 %v1040_v52 }
 0x465   : > { %1044 = vadd.xlane.f32.xlu1 %v1043_v55 }
 0x474   : > { %v1061_v57 = vpop.permute.xlu1 %1060 }
 0x475   : > { %1069 = vxpose.xlu2.b32.end [4/4] (short) (narrow) %v1061_v57, 8 }
 0x477   : > { %1191 = vxpose.xlu0.b32.start [1/4] (short) (narrow) %v2678_v61, 8 }
 0x47c   : > { %v1112_v48 = vpop.permute.xlu1 %1111 }
 0x47d   : > { %1316 = vxpose.xlu2.b32.start [1/4] (short) (narrow) %v2682_v6, 8 }
 0x47f   : > { %1192 = vxpose.xlu0.b32.cont [2/4] (short) (narrow) %v1182_v46, 8 }
 0x484   : > { %v1186_v9 = vpop.permute.xlu1 %1185 }
 0x485   : > { %1317 = vxpose.xlu2.b32.cont [2/4] (short) (narrow) %v1307_v21, 8 }
 0x487   : > { %1193 = vxpose.xlu0.b32.cont [3/4] (short) (narrow) %v1184_v60, 8 }
 0x48c   : > { %v1311_v10 = vpop.permute.xlu1 %1310 }
 0x48d   : > { %1318 = vxpose.xlu2.b32.cont [3/4] (short) (narrow) %v1309_v11, 8 }
 0x48f   : > { %1194 = vxpose.xlu0.b32.end [4/4] (short) (narrow) %v1186_v9, 8 }
 0x494   : > { %v2724_v15 = vpop.permute.xlu1 %1361 }
 0x495   : > { %1319 = vxpose.xlu2.b32.end [4/4] (short) (narrow) %v1311_v10, 8 }
 0x49d   : > { %v2726_v17 = vpop.permute.xlu1 %1236 }
 0x4c1   : > { %v2765_v55 = vpop.xlane.xlu0 %1532 }
 0x4c8   : > { %v966_v20 = vpop.xlane.xlu1 %965 }
 0x4d0   : > { %v1042_v61 = vpop.xlane.xlu1 %1041 }
 0x4d1   : > { %2210 = vrcp.f32 %v1042_v61 }
 0x4d2   : > { %2212 = vrcp.f32 %v963_v12 }
 0x4d7   : > { %v2211_v16 = vpop.eup %2210 }
 0x4d8   : > { %v1048_v6 = vmul.f32 %v2211_v16, %v2207_v53  ;;  %v1045_v18 = vpop.xlane.xlu1 %1044  ;;  %v2213_v21 = vpop.eup %2212 }
 0x4d9   : > { %2214 = vrcp.f32 %v1045_v18  ;;  %v969_v19 = vmul.f32 %v2213_v21, %v2669_v56 }
 0x4da   : > { %2054 = vmatmul.msk.f32.vlgmr.msra.gmra.mxu1 %vm349_vm2, %v1048_v6  ;;  %2216 = vrcp.f32 %v966_v20 }
 0x4db   : > { %1877 = vmatpush.msra.mxu1 %v2597_v1 }
 0x4df   : > { %v2215_v11 = vpop.eup %2214 }
 0x4e0   : > { %v1049_v63 = vmul.f32 %v2215_v11, %v2209_v54  ;;  %v2217_v22 = vpop.eup %2216 }
 0x4e1   : > { %v970_v23 = vmul.f32 %v2217_v22, %v2205_v41 }
 0x4e2   : > { %2055 = vmatmul.msk.f32.vlgmr.msrb.gmra.mxu2 %vm349_vm2, %v1049_v63  ;;  %2056 = vmatmul.msk.f32.vlgmr.msrb.gmra.mxu1 %vm349_vm2, %v969_v19 }
 0x4ea   : > { %2057 = vmatmul.msk.f32.gmra.mxu1 %vm349_vm2, %v970_v23  ;;  %v1475_v23 = vsel %vm403_vm1, %v2716_v33, -inf }
 0x4f6   : > { %v1082_v24 = vpop.trf.xlu2 }
 0x4f7   : > { %v1114_v34 = vperm.slane %v1082_v24, 0 }
 0x4f9   : > { %v1116_v25 = vadd.f32 %v1114_v34, %v2690_v5  ;;  %v1115_v1 = vadd.f32 %v1114_v34, %v2676_v59  ;;  %v1118_v28 = vadd.f32 %v1114_v34, %v1112_v48  ;;  %v1117_v14 = vadd.f32 %v1114_v34, %v2695_v3 }
 0x4fb   : > { %vm1120_vm13 = vcmp.gt.f32.partialorder %v1116_v25, 0.0  ;;  %v1124_v56 = vmul.f32 0.2, %v1116_v25  ;;  %vm1119_vm14 = vcmp.gt.f32.partialorder %v1115_v1, 0.0  ;;  %v1123_v4 = vmul.f32 0.2, %v1115_v1 }
 0x4fc   : > { %vm1122_vm3 = vcmp.gt.f32.partialorder %v1118_v28, 0.0  ;;  %v1126_v40 = vmul.f32 0.2, %v1118_v28  ;;  %v1125_v49 = vmul.f32 0.2, %v1117_v14  ;;  %vm1121_vm5 = vcmp.gt.f32.partialorder %v1117_v14, 0.0 }
 0x4fd   : > { %v1128_v0 = vsel %vm1120_vm13, %v1116_v25, %v1124_v56  ;;  %v1127_v41 = vsel %vm1119_vm14, %v1115_v1, %v1123_v4 }
 0x4fe   : > { %v2741_v5 = vsel %vm392_vm4, %v1128_v0, -9e+15  ;;  %v2745_v59 = vsel %vm391_vm15, %v1127_v41, -9e+15  ;;  %v1130_v50 = vsel %vm1122_vm3, %v1118_v28, %v1126_v40  ;;  %v1129_v31 = vsel %vm1121_vm5, %v1117_v14, %v1125_v49 }
 0x4ff   : > { %v1138_v3 = vsel %vm317_vm0, %v2741_v5, -inf  ;;  %v1135_v47 = vsel %vm317_vm0, %v2745_v59, -inf  ;;  %v2754_v51 = vsel %vm394_vm6, %v1130_v50, -9e+15  ;;  %v2759_v53 = vsel %vm393_vm7, %v1129_v31, -9e+15 }
 0x500   : > { %1139 = vmax.xlane.f32.xlu0 %v1138_v3  ;;  %1136 = vmax.xlane.f32.xlu1 %v1135_v47  ;;  %v1144_v52 = vsel %vm317_vm0, %v2754_v51, -inf  ;;  %v1141_v54 = vsel %vm317_vm0, %v2759_v53, -inf  ;;  %vm444_vm5 = vcmp.ne.f32.partialorder %v2614_v45, 0.0 }
 0x506   : > { %1145 = vmax.xlane.f32.xlu2 %v1144_v52 }
 0x508   : > { %1142 = vmax.xlane.f32.xlu0 %v1141_v54 }
 0x516   : > { %v1332_v46 = vpop.trf.xlu2 }
 0x517   : > { %v1364_v57 = vperm.slane %v1332_v46, 0 }
 0x519   : > { %v1366_v48 = vadd.f32 %v1364_v57, %v2686_v8  ;;  %v1365_v60 = vadd.f32 %v1364_v57, %v2684_v7  ;;  %v1367_v22 = vadd.f32 %v1364_v57, %v2698_v37  ;;  %v1368_v56 = vadd.f32 %v1364_v57, %v2724_v15 }
 0x51b   : > { %v1207_v9 = vpop.trf.xlu0  ;;  %vm1370_vm8 = vcmp.gt.f32.partialorder %v1366_v48, 0.0  ;;  %v1374_v10 = vmul.f32 0.2, %v1366_v48  ;;  %vm1369_vm9 = vcmp.gt.f32.partialorder %v1365_v60, 0.0  ;;  %v1373_v20 = vmul.f32 0.2, %v1365_v60 }
 0x51c   : > { %v1239_v61 = vperm.slane %v1207_v9, 0  ;;  %v1375_v34 = vmul.f32 0.2, %v1367_v22  ;;  %vm1371_vm14 = vcmp.gt.f32.partialorder %v1367_v22, 0.0  ;;  %v1376_v40 = vmul.f32 0.2, %v1368_v56 }
 0x51d   : > { %v1378_v12 = vsel %vm1370_vm8, %v1366_v48, %v1374_v10  ;;  %v1377_v16 = vsel %vm1369_vm9, %v1365_v60, %v1373_v20 }
 0x51e   : > { %v2771_v6 = vsel %vm442_vm11, %v1378_v12, -9e+15  ;;  %v2773_v18 = vsel %vm441_vm10, %v1377_v16, -9e+15  ;;  %v1240_v8 = vadd.f32 %v1239_v61, %v2680_v62  ;;  %v1241_v7 = vadd.f32 %v1239_v61, %v2721_v58 }
 0x51f   : > { %v1388_v21 = vsel %vm317_vm0, %v2771_v6, -inf  ;;  %v1385_v11 = vsel %vm317_vm0, %v2773_v18, -inf  ;;  %v1379_v25 = vsel %vm1371_vm14, %v1367_v22, %v1375_v34  ;;  %v1242_v1 = vadd.f32 %v1239_v61, %v2700_v13 }
 0x520   : > { %1389 = vmax.xlane.f32.xlu1 %v1388_v21  ;;  %1386 = vmax.xlane.f32.xlu2 %v1385_v11  ;;  %vm1244_vm12 = vcmp.gt.f32.partialorder %v1240_v8, 0.0  ;;  %v1248_v42 = vmul.f32 0.2, %v1240_v8  ;;  %v1249_v19 = vmul.f32 0.2, %v1241_v7  ;;  %vm1245_vm13 = vcmp.gt.f32.partialorder %v1241_v7, 0.0 }
 0x521   : > { %v1250_v28 = vmul.f32 0.2, %v1242_v1  ;;  %vm1246_vm3 = vcmp.gt.f32.partialorder %v1242_v1, 0.0  ;;  %v2192_v13 = vpack.i.bf16 %v2502_v38, %v2504_v39  ;;  %v1243_v41 = vadd.f32 %v1239_v61, %v2726_v17 }
 0x522   : > { %v1252_v43 = vsel %vm1244_vm12, %v1240_v8, %v1248_v42  ;;  %v1253_v58 = vsel %vm1245_vm13, %v1241_v7, %v1249_v19 }
 0x523   : > { %v2783_v63 = vsel %vm391_vm15, %v1252_v43, -9e+15  ;;  %v2792_v24 = vsel %vm392_vm4, %v1253_v58, -9e+15  ;;  %vm443_vm15 = vcmp.ne.f32.partialorder %v2612_v44, 0.0  ;;  %v1254_v14 = vsel %vm1246_vm3, %v1242_v1, %v1250_v28 }
 0x524   : > { %v1260_v62 = vsel %vm317_vm0, %v2783_v63, -inf  ;;  %v1263_v29 = vsel %vm317_vm0, %v2792_v24, -inf  ;;  %v2798_v37 = vsel %vm443_vm15, %v1379_v25, -9e+15  ;;  %v2805_v4 = vsel %vm393_vm7, %v1254_v14, -9e+15 }
 0x525   : > { %1261 = vmax.xlane.f32.xlu0 %v1260_v62  ;;  %v1391_v30 = vsel %vm317_vm0, %v2798_v37, -inf  ;;  %vm1372_vm4 = vcmp.gt.f32.partialorder %v1368_v56, 0.0  ;;  %v1266_v44 = vsel %vm317_vm0, %v2805_v4, -inf  ;;  %v1251_v15 = vmul.f32 0.2, %v1243_v41 }
 0x526   : > { %v1380_v0 = vsel %vm1372_vm4, %v1368_v56, %v1376_v40  ;;  %vm1247_vm7 = vcmp.gt.f32.partialorder %v1243_v41, 0.0 }
 0x527   : > { %v2814_v32 = vsel %vm444_vm5, %v1380_v0, -9e+15  ;;  %v1255_v3 = vsel %vm1247_vm7, %v1243_v41, %v1251_v15 }
 0x528   : > { %1476 = vmax.xlane.f32.xlu2 %v1475_v23  ;;  %v1394_v49 = vsel %vm317_vm0, %v2814_v32, -inf  ;;  %v2820_v38 = vsel %vm394_vm6, %v1255_v3, -9e+15 }
 0x529   : > { %v1269_v39 = vsel %vm317_vm0, %v2820_v38, -inf }
 0x52d   : > { %1264 = vmax.xlane.f32.xlu0 %v1263_v29 }
 0x535   : > { %1392 = vmax.xlane.f32.xlu0 %v1391_v30 }
 0x53d   : > { %1267 = vmax.xlane.f32.xlu0 %v1266_v44 }
 0x540   : > { %2193 = vrot.lane.b32.xlu2 %v2192_v13, %s2321_s20 }
 0x545   : > { %1395 = vmax.xlane.f32.xlu0 %v1394_v49 }
 0x54d   : > { %1270 = vmax.xlane.f32.xlu0 %v1269_v39 }
 0x557   : > { %v1565_v45 = vpop.f32.mrf.mxu1 }
 0x55f   : > { %v1594_v17 = vpop.f32.mrf.mxu1 }
 0x560   : > { %v1595_v47 = vadd.f32 %v1594_v17, %v1565_v45 }
 0x562   : > { %v2058_v50 = vmul.f32 -1.442695, %v1595_v47 }
 0x564   : > { %2218 = vpow2.f32 %v2058_v50 }
 0x565   : > { %v1568_v31 = vpop.f32.mrf.mxu2 }
 0x567   : > { %v1597_v52 = vpop.f32.mrf.mxu1 }
 0x568   : > { %v1598_v54 = vadd.f32 %v1597_v52, %v1568_v31 }
 0x56a   : > { %v2219_v46 = vpop.eup %2218  ;;  %v2059_v57 = vmul.f32 -1.442695, %v1598_v54 }
 0x56b   : > { %v1606_v48 = vadd.f32 1.0, %v2219_v46 }
 0x56c   : > { %2220 = vpow2.f32 %v2059_v57 }
 0x56d   : > { %2222 = vrcp.f32 %v1606_v48  ;;  %v1619_v7 = vand.u32 2147483648, %v1606_v48  ;;  %v1617_v42 = vand.u32 2147483647, %v1606_v48  ;;  %vm1613_vm8 = vweird.f32 %v1606_v48 }
 0x56f   : > { %vm1618_vm10 = vcmp.eq.f32.partialorder %v1617_v42, 8.507059e+37  ;;  %v1534_v42 = vsub.f32 %v2707_v27, %v2765_v55 }
 0x572   : > { %v2221_v2 = vpop.eup %2220 }
 0x573   : > { %v2223_v60 = vpop.eup %2222  ;;  %v1607_v9 = vadd.f32 1.0, %v2221_v2  ;;  %v1140_v10 = vpop.xlane.xlu0 %1139 }
 0x574   : > { %v1137_v20 = vpop.xlane.xlu1 %1136  ;;  %v1609_v61 = vmul.f32 %v2223_v60, %v1606_v48  ;;  %v1148_v21 = vsub.f32 %v2741_v5, %v1140_v10  ;;  %vm1614_vm6 = vweird.f32 %v2223_v60 }
 0x575   : > { %v1147_v12 = vsub.f32 %v2745_v59, %v1137_v20  ;;  %2224 = vrcp.f32 %v1607_v9  ;;  %vm1615_vm9 = vmor %vm1613_vm8, %vm1614_vm6  ;;  %v1620_v59 = vor.u32 1.1754944e-38, %v1619_v7  ;;  %v1634_v28 = vand.u32 2147483648, %v1607_v9 }
 0x576   : > { %v1610_v16 = vsub.f32 1.0, %v1609_v61  ;;  %v1153_v62 = vmul.f32 1.442695, %v1148_v21  ;;  %v1632_v40 = vand.u32 2147483647, %v1607_v9  ;;  %vm1628_vm12 = vweird.f32 %v1607_v9 }
 0x577   : > { %v1151_v8 = vmul.f32 1.442695, %v1147_v12  ;;  %v1635_v13 = vor.u32 1.1754944e-38, %v1634_v28 }
 0x578   : > { %v1611_v11 = vmul.f32 %v2223_v60, %v1610_v16  ;;  %vm1633_vm14 = vcmp.eq.f32.partialorder %v1632_v40, 8.507059e+37 }
 0x579   : > { %2226 = vpow2.f32 %v1151_v8  ;;  %v1146_v23 = vpop.xlane.xlu2 %1145 }
 0x57a   : > { %v1612_v43 = vadd.f32 %v2223_v60, %v1611_v11  ;;  %2228 = vpow2.f32 %v1153_v62  ;;  %v1150_v30 = vsub.f32 %v2754_v51, %v1146_v23 }
 0x57b   : > { %v2225_v19 = vpop.eup %2224  ;;  %v1143_v58 = vpop.xlane.xlu0 %1142 }
 0x57c   : > { %v1616_v22 = vsel %vm1615_vm9, %v2223_v60, %v1612_v43  ;;  %v1624_v5 = vmul.f32 %v2225_v19, %v1607_v9  ;;  %v1149_v29 = vsub.f32 %v2759_v53, %v1143_v58  ;;  %vm1629_vm11 = vweird.f32 %v2225_v19 }
 0x57d   : > { %v1621_v34 = vsel %vm1618_vm10, %v1620_v59, %v1616_v22  ;;  %vm1630_vm13 = vmor %vm1628_vm12, %vm1629_vm11  ;;  %v1157_v0 = vmul.f32 1.442695, %v1150_v30  ;;  %v1535_v59 = vmul.f32 1.442695, %v1534_v42 }
 0x57e   : > { %1638 = vst.msk [vmem:[%s2831_s25] sm:$0xff] %vm349_vm2, %v1621_v34  ;;  %v1625_v25 = vsub.f32 1.0, %v1624_v5  ;;  %v1155_v14 = vmul.f32 1.442695, %v1149_v29 }
 0x57f   : > { %v2836_v1 = vpop.eup %2226 }
 0x580   : > { %v1626_v56 = vmul.f32 %v2225_v19, %v1625_v25  ;;  %v1159_v44 = vsel %vm317_vm0, %v2836_v1, 0.0  ;;  %2230 = vpow2.f32 %v1155_v14  ;;  %v2841_v15 = vpop.eup %2228 }
 0x581   : > { %1160 = vadd.xlane.f32.xlu0 %v1159_v44  ;;  %2232 = vpow2.f32 %v1157_v0  ;;  %v1162_v3 = vsel %vm317_vm0, %v2841_v15, 0.0 }
 0x582   : > { %v1627_v53 = vadd.f32 %v2225_v19, %v1626_v56 }
 0x584   : > { %v1631_v41 = vsel %vm1630_vm13, %v2225_v19, %v1627_v53 }
 0x585   : > { %v1636_v51 = vsel %vm1633_vm14, %v1635_v13, %v1631_v41 }
 0x586   : > { %1639 = vst.msk [vmem:[%s2831_s25 + $0x8] sm:$0xff] %vm349_vm2, %v1636_v51  ;;  %v2845_v49 = vpop.eup %2230 }
 0x587   : > { %v1165_v39 = vsel %vm317_vm0, %v2845_v49, 0.0  ;;  %v2851_v45 = vpop.eup %2232 }
 0x588   : > { %1166 = vadd.xlane.f32.xlu1 %v1165_v39  ;;  %v1168_v17 = vsel %vm317_vm0, %v2851_v45, 0.0 }
 0x589   : > { %1163 = vadd.xlane.f32.xlu0 %v1162_v3 }
 0x591   : > { %1169 = vadd.xlane.f32.xlu0 %v1168_v17 }
 0x593   : > { %v1387_v47 = vpop.xlane.xlu2 %1386  ;;  %v1390_v48 = vpop.xlane.xlu1 %1389 }
 0x594   : > { %v1397_v50 = vsub.f32 %v2773_v18, %v1387_v47  ;;  %v1398_v60 = vsub.f32 %v2771_v6, %v1390_v48  ;;  %v2197_v18 = vpack.i.bf16 %v2494_v35, %v2497_v36 }
 0x596   : > { %v1401_v31 = vmul.f32 1.442695, %v1397_v50  ;;  %v1403_v20 = vmul.f32 1.442695, %v1398_v60 }
 0x598   : > { %v1262_v52 = vpop.xlane.xlu0 %1261  ;;  %2234 = vpow2.f32 %v1401_v31 }
 0x599   : > { %v1272_v54 = vsub.f32 %v2783_v63, %v1262_v52 }
 0x59b   : > { %v1276_v46 = vmul.f32 1.442695, %v1272_v54  ;;  %v1477_v57 = vpop.xlane.xlu2 %1476 }
 0x59c   : > { %v1478_v29 = vsub.f32 %v2716_v33, %v1477_v57 }
 0x59d   : > { %2236 = vpow2.f32 %v1276_v46 }
 0x59e   : > { %v2857_v2 = vpop.eup %2234  ;;  %2238 = vpow2.f32 %v1403_v20 }
 0x59f   : > { %v1409_v10 = vsel %vm317_vm0, %v2857_v2, 0.0 }
 0x5a0   : > { %v1265_v9 = vpop.xlane.xlu0 %1264  ;;  %1410 = vadd.xlane.f32.xlu0 %v1409_v10 }
 0x5a1   : > { %2198 = vrot.lane.b32.xlu1 %v2197_v18, %s2321_s20  ;;  %v1273_v6 = vsub.f32 %v2792_v24, %v1265_v9 }
 0x5a3   : > { %v2194_v63 = vpop.permute.xlu2 %2193  ;;  %v2865_v12 = vpop.eup %2236  ;;  %v1278_v36 = vmul.f32 1.442695, %v1273_v6 }
 0x5a4   : > { %v2195_v61 = vunpack.i.l.bf16 %v2194_v63  ;;  %v2196_v16 = vunpack.i.h.bf16 %v2194_v63  ;;  %v1284_v7 = vsel %vm317_vm0, %v2865_v12, 0.0  ;;  %v2871_v11 = vpop.eup %2238 }
 0x5a5   : > { %v1412_v24 = vsel %vm317_vm0, %v2871_v11, 0.0 }
 0x5a6   : > { %1758 = vmatpush.msra.mxu2 %v2195_v61 }
 0x5a8   : > { %v1393_v8 = vpop.xlane.xlu0 %1392  ;;  %1759 = vmatpush.msra.mxu2 %v2196_v16  ;;  %1285 = vadd.xlane.f32.xlu0 %v1284_v7 }
 0x5a9   : > { %v1399_v35 = vsub.f32 %v2798_v37, %v1393_v8 }
 0x5ab   : > { %v1405_v21 = vmul.f32 1.442695, %v1399_v35 }
 0x5ad   : > { %2240 = vpow2.f32 %v1405_v21 }
 0x5ae   : > { %2242 = vpow2.f32 %v1278_v36 }
 0x5af   : > { %2244 = vpow2.f32 %v1535_v59 }
 0x5b0   : > { %v1268_v43 = vpop.xlane.xlu0 %1267  ;;  %1413 = vadd.xlane.f32.xlu0 %v1412_v24 }
 0x5b1   : > { %v1274_v58 = vsub.f32 %v2805_v4, %v1268_v43  ;;  %v1479_v4 = vmul.f32 1.442695, %v1478_v29 }
 0x5b3   : > { %v2877_v19 = vpop.eup %2240  ;;  %v1280_v5 = vmul.f32 1.442695, %v1274_v58 }
 0x5b4   : > { %v1415_v37 = vsel %vm317_vm0, %v2877_v19, 0.0  ;;  %v2881_v62 = vpop.eup %2242 }
 0x5b5   : > { %1416 = vadd.xlane.f32.xlu2 %v1415_v37  ;;  %v1287_v27 = vsel %vm317_vm0, %v2881_v62, 0.0  ;;  %v2887_v23 = vpop.eup %2244  ;;  %2246 = vpow2.f32 %v1280_v5 }
 0x5b6   : > { %v1537_v25 = vsel %vm403_vm1, %v2887_v23, 0.0 }
 0x5b8   : > { %v1396_v22 = vpop.xlane.xlu0 %1395  ;;  %1288 = vadd.xlane.f32.xlu0 %v1287_v27 }
 0x5b9   : > { %v1400_v55 = vsub.f32 %v2814_v32, %v1396_v22 }
 0x5bb   : > { %v1407_v34 = vmul.f32 1.442695, %v1400_v55  ;;  %v2892_v30 = vpop.eup %2246 }
 0x5bc   : > { %v1290_v56 = vsel %vm317_vm0, %v2892_v30, 0.0 }
 0x5bd   : > { %2248 = vpow2.f32 %v1407_v34 }
 0x5be   : > { %2250 = vpow2.f32 %v1479_v4 }
 0x5c0   : > { %1538 = vadd.xlane.f32.xlu0 %v1537_v25  ;;  %v1271_v28 = vpop.xlane.xlu0 %1270 }
 0x5c1   : > { %v1275_v14 = vsub.f32 %v2820_v38, %v1271_v28 }
 0x5c3   : > { %v2895_v32 = vpop.eup %2248  ;;  %v1282_v33 = vmul.f32 1.442695, %v1275_v14 }
 0x5c4   : > { %v1418_v40 = vsel %vm317_vm0, %v2895_v32, 0.0  ;;  %v2901_v44 = vpop.eup %2250 }
 0x5c5   : > { %2252 = vpow2.f32 %v1282_v33  ;;  %v1481_v53 = vsel %vm403_vm1, %v2901_v44, 0.0 }
 0x5c8   : > { %1291 = vadd.xlane.f32.xlu0 %v1290_v56 }
 0x5cb   : > { %1419 = vadd.xlane.f32.xlu1 %v1418_v40  ;;  %v2905_v13 = vpop.eup %2252 }
 0x5cc   : > { %v1293_v38 = vsel %vm317_vm0, %v2905_v13, 0.0 }
 0x5d0   : > { %1482 = vadd.xlane.f32.xlu0 %v1481_v53 }
 0x5d8   : > { %1294 = vadd.xlane.f32.xlu0 %v1293_v38 }
 0x5ec   : > { %1882 = vrot.lane.b32.xlu0 %v2572_v26, %s2321_s20 }
 0x5f4   : > { %v1161_v0 = vpop.xlane.xlu0 %1160 }
 0x5f5   : > { %2254 = vrcp.f32 %v1161_v0 }
 0x5fb   : > { %v2255_v41 = vpop.eup %2254  ;;  %v1167_v39 = vpop.xlane.xlu1 %1166 }
 0x5fc   : > { %v1175_v51 = vmul.f32 %v2255_v41, %v2836_v1  ;;  %v1164_v3 = vpop.xlane.xlu0 %1163 }
 0x5fd   : > { %2256 = vrcp.f32 %v1164_v3 }
 0x5fe   : > { %2064 = vmatmul.msk.f32.vlgmr.msrb.gmra.mxu3 %vm317_vm0, %v1175_v51  ;;  %2258 = vrcp.f32 %v1167_v39 }
 0x603   : > { %v2257_v17 = vpop.eup %2256 }
 0x604   : > { %v1176_v47 = vmul.f32 %v2257_v17, %v2841_v15  ;;  %v1170_v50 = vpop.xlane.xlu0 %1169  ;;  %v2259_v31 = vpop.eup %2258 }
 0x605   : > { %2260 = vrcp.f32 %v1170_v50  ;;  %v1177_v26 = vmul.f32 %v2259_v31, %v2845_v49 }
 0x606   : > { %2065 = vmatmul.msk.f32.gmra.mxu3 %vm317_vm0, %v1176_v47 }
 0x60b   : > { %v2261_v52 = vpop.eup %2260 }
 0x60c   : > { %v1178_v46 = vmul.f32 %v2261_v52, %v2851_v45 }
 0x60e   : > { %2066 = vmatmul.msk.f32.gmra.mxu3 %vm317_vm0, %v1177_v26 }
 0x613   : > { %v2199_v1 = vpop.permute.xlu1 %2198  ;;  %v1411_v54 = vpop.xlane.xlu0 %1410 }
 0x614   : > { %v2200_v57 = vunpack.i.l.bf16 %v2199_v1  ;;  %2262 = vrcp.f32 %v1411_v54  ;;  %v2201_v48 = vunpack.i.h.bf16 %v2199_v1 }
 0x616   : > { %2067 = vmatmul.msk.f32.gmra.mxu3 %vm317_vm0, %v1178_v46  ;;  %1760 = vmatpush.msra.mxu2 %v2200_v57 }
 0x618   : > { %1761 = vmatpush.msra.mxu2 %v2201_v48 }
 0x61a   : > { %v2263_v15 = vpop.eup %2262 }
 0x61b   : > { %v1425_v60 = vmul.f32 %v2263_v15, %v2857_v2  ;;  %v1286_v9 = vpop.xlane.xlu0 %1285 }
 0x61c   : > { %2264 = vrcp.f32 %v1286_v9 }
 0x61d   : > { %2068 = vmatmul.msk.f32.vlgmr.msra.gmra.mxu2 %vm317_vm0, %v1425_v60 }
 0x622   : > { %v2265_v49 = vpop.eup %2264 }
 0x623   : > { %v1300_v10 = vmul.f32 %v2265_v49, %v2865_v12  ;;  %v1414_v18 = vpop.xlane.xlu0 %1413 }
 0x624   : > { %2266 = vrcp.f32 %v1414_v18 }
 0x625   : > { %2060 = vmatmul.msk.f32.vlgmr.msrb.gmra.mxu0 %vm317_vm0, %v1300_v10 }
 0x628   : > { %v1417_v45 = vpop.xlane.xlu2 %1416 }
 0x629   : > { %2268 = vrcp.f32 %v1417_v45 }
 0x62a   : > { %v2267_v20 = vpop.eup %2266 }
 0x62b   : > { %v1289_v63 = vpop.xlane.xlu0 %1288  ;;  %v1426_v61 = vmul.f32 %v2267_v20, %v2871_v11 }
 0x62c   : > { %2270 = vrcp.f32 %v1289_v63 }
 0x62d   : > { %2069 = vmatmul.msk.f32.gmra.mxu2 %vm317_vm0, %v1426_v61 }
 0x62f   : > { %v2269_v2 = vpop.eup %2268 }
 0x630   : > { %v1427_v12 = vmul.f32 %v2269_v2, %v2877_v19 }
 0x632   : > { %v2271_v16 = vpop.eup %2270 }
 0x633   : > { %v1539_v6 = vpop.xlane.xlu0 %1538  ;;  %v1301_v8 = vmul.f32 %v2271_v16, %v2881_v62 }
 0x634   : > { %2272 = vrcp.f32 %v1539_v6 }
 0x635   : > { %2061 = vmatmul.msk.f32.gmra.mxu0 %vm317_vm0, %v1301_v8  ;;  %2070 = vmatmul.msk.f32.gmra.mxu2 %vm317_vm0, %v1427_v12 }
 0x63a   : > { %v2273_v7 = vpop.eup %2272 }
 0x63b   : > { %v1541_v35 = vmul.f32 %v2273_v7, %v2887_v23  ;;  %v1292_v36 = vpop.xlane.xlu0 %1291 }
 0x63c   : > { %2274 = vrcp.f32 %v1292_v36 }
 0x63d   : > { %2076 = vmatmul.msk.f32.vlgmr.msra.gmra.mxu1 %vm403_vm1, %v1541_v35 }
 0x63e   : > { %v1420_v21 = vpop.xlane.xlu1 %1419 }
 0x63f   : > { %2276 = vrcp.f32 %v1420_v21 }
 0x642   : > { %v2275_v11 = vpop.eup %2274 }
 0x643   : > { %v1483_v42 = vpop.xlane.xlu0 %1482  ;;  %v1302_v43 = vmul.f32 %v2275_v11, %v2892_v30 }
 0x645   : > { %v2277_v24 = vpop.eup %2276  ;;  %2062 = vmatmul.msk.f32.gmra.mxu0 %vm317_vm0, %v1302_v43 }
 0x646   : > { %v1428_v19 = vmul.f32 %v2277_v24, %v2895_v32 }
 0x648   : > { %2071 = vmatmul.msk.f32.gmra.mxu2 %vm317_vm0, %v1428_v19 }
 0x64b   : > { %v1295_v59 = vpop.xlane.xlu0 %1294 }
 0x64c   : > { %2278 = vrcp.f32 %v1295_v59 }
 0x64d   : > { %2280 = vrcp.f32 %v1483_v42 }
 0x652   : > { %v2279_v37 = vpop.eup %2278 }
 0x653   : > { %v1303_v62 = vmul.f32 %v2279_v37, %v2905_v13  ;;  %v2281_v58 = vpop.eup %2280 }
 0x654   : > { %v1485_v22 = vmul.f32 %v2281_v58, %v2901_v44 }
 0x655   : > { %2063 = vmatmul.msk.f32.gmra.mxu0 %vm317_vm0, %v1303_v62 }
 0x65e   : > { %v1883_v27 = vpop.permute.xlu0 %1882 }
 0x65f   : > { %1903 = vmatpush.msrb.mxu1 %v1883_v27 }
 0x660   : > { %2077 = vmatmul.msk.f32.vlgmr.msrb.gmra.mxu1 %vm403_vm1, %v1485_v22 }
 0x681   : > { %v1710_v55 = vpop.f32.mrf.mxu3 }
 0x689   : > { %v1713_v30 = vpop.f32.mrf.mxu3 }
 0x691   : > { %v1716_v50 = vpop.f32.mrf.mxu3 }
 0x699   : > { %v1719_v61 = vpop.f32.mrf.mxu3 }
 0x6a0   : > { %v1763_v34 = vpop.f32.mrf.mxu2 }
 0x6a2   : > { %v1669_v5 = vpop.f32.mrf.mxu0 }
 0x6a3   : > { %v1711_v23 = vadd.f32 %v1710_v55, %v1669_v5 }
 0x6a5   : > { %v1775_v29 = vadd.f32 %v1763_v34, %v1711_v23 }
 0x6a7   : > { %v2072_v25 = vmul.f32 -1.442695, %v1775_v29 }
 0x6a9   : > { %2282 = vpow2.f32 %v2072_v25 }
 0x6af   : > { %v2283_v4 = vpop.eup %2282 }
 0x6b0   : > { %v1791_v28 = vadd.f32 1.0, %v2283_v4  ;;  %v1766_v56 = vpop.f32.mrf.mxu2 }
 0x6b2   : > { %2284 = vrcp.f32 %v1791_v28  ;;  %v1672_v14 = vpop.f32.mrf.mxu0  ;;  %v1806_v38 = vand.u32 2147483648, %v1791_v28  ;;  %v1804_v41 = vand.u32 2147483647, %v1791_v28  ;;  %vm1800_vm1 = vweird.f32 %v1791_v28 }
 0x6b3   : > { %v1714_v32 = vadd.f32 %v1713_v30, %v1672_v14 }
 0x6b4   : > { %v1807_v39 = vor.u32 1.1754944e-38, %v1806_v38  ;;  %vm1805_vm3 = vcmp.eq.f32.partialorder %v1804_v41, 8.507059e+37 }
 0x6b5   : > { %v1776_v33 = vadd.f32 %v1766_v56, %v1714_v32 }
 0x6b7   : > { %v2073_v40 = vmul.f32 -1.442695, %v1776_v33 }
 0x6b8   : > { %v2285_v44 = vpop.eup %2284  ;;  %v1769_v1 = vpop.f32.mrf.mxu2 }
 0x6b9   : > { %v1796_v53 = vmul.f32 %v2285_v44, %v1791_v28  ;;  %2286 = vpow2.f32 %v2073_v40  ;;  %vm1801_vm0 = vweird.f32 %v2285_v44 }
 0x6ba   : > { %vm1802_vm15 = vmor %vm1800_vm1, %vm1801_vm0  ;;  %v1879_v12 = vpop.f32.mrf.mxu1 }
 0x6bb   : > { %v1797_v13 = vsub.f32 1.0, %v1796_v53 }
 0x6bd   : > { %v1798_v0 = vmul.f32 %v2285_v44, %v1797_v13 }
 0x6bf   : > { %v2287_v51 = vpop.eup %2286  ;;  %v1799_v3 = vadd.f32 %v2285_v44, %v1798_v0 }
 0x6c0   : > { %v1792_v17 = vadd.f32 1.0, %v2287_v51 }
 0x6c1   : > { %v1803_v47 = vsel %vm1802_vm15, %v2285_v44, %v1799_v3 }
 0x6c2   : > { %v1808_v31 = vsel %vm1805_vm3, %v1807_v39, %v1803_v47  ;;  %2288 = vrcp.f32 %v1792_v17  ;;  %v1675_v26 = vpop.f32.mrf.mxu0  ;;  %v1821_v60 = vand.u32 2147483648, %v1792_v17  ;;  %v1819_v49 = vand.u32 2147483647, %v1792_v17 }
 0x6c3   : > { %1855 = vst.msk [vmem:[%s2831_s25 + $0x10] sm:$0xff] %vm349_vm2, %v1808_v31  ;;  %v1717_v52 = vadd.f32 %v1716_v50, %v1675_v26  ;;  %vm1815_vm5 = vweird.f32 %v1792_v17 }
 0x6c4   : > { %v1822_v45 = vor.u32 1.1754944e-38, %v1821_v60  ;;  %vm1820_vm6 = vcmp.eq.f32.partialorder %v1819_v49, 8.507059e+37 }
 0x6c5   : > { %v1777_v54 = vadd.f32 %v1769_v1, %v1717_v52 }
 0x6c7   : > { %v2074_v46 = vmul.f32 -1.442695, %v1777_v54 }
 0x6c8   : > { %v2289_v57 = vpop.eup %2288 }
 0x6c9   : > { %v1811_v48 = vmul.f32 %v2289_v57, %v1792_v17  ;;  %2290 = vpow2.f32 %v2074_v46  ;;  %vm1816_vm4 = vweird.f32 %v2289_v57 }
 0x6ca   : > { %vm1817_vm7 = vmor %vm1815_vm5, %vm1816_vm4 }
 0x6cb   : > { %v1812_v15 = vsub.f32 1.0, %v1811_v48  ;;  %v1772_v8 = vpop.f32.mrf.mxu2 }
 0x6cd   : > { %v1813_v9 = vmul.f32 %v2289_v57, %v1812_v15 }
 0x6cf   : > { %v2291_v10 = vpop.eup %2290  ;;  %v1814_v18 = vadd.f32 %v2289_v57, %v1813_v9 }
 0x6d0   : > { %v1793_v20 = vadd.f32 1.0, %v2291_v10 }
 0x6d1   : > { %v1818_v63 = vsel %vm1817_vm7, %v2289_v57, %v1814_v18 }
 0x6d2   : > { %v1823_v2 = vsel %vm1820_vm6, %v1822_v45, %v1818_v63  ;;  %2292 = vrcp.f32 %v1793_v20  ;;  %v1678_v16 = vpop.f32.mrf.mxu0  ;;  %v1836_v42 = vand.u32 2147483648, %v1793_v20  ;;  %v1834_v24 = vand.u32 2147483647, %v1793_v20 }
 0x6d3   : > { %1856 = vst.msk [vmem:[%s2831_s25 + $0x18] sm:$0xff] %vm349_vm2, %v1823_v2  ;;  %v1720_v6 = vadd.f32 %v1719_v61, %v1678_v16  ;;  %vm1830_vm9 = vweird.f32 %v1793_v20 }
 0x6d4   : > { %v1837_v58 = vor.u32 1.1754944e-38, %v1836_v42  ;;  %vm1835_vm11 = vcmp.eq.f32.partialorder %v1834_v24, 8.507059e+37 }
 0x6d5   : > { %v1778_v7 = vadd.f32 %v1772_v8, %v1720_v6 }
 0x6d7   : > { %v2075_v35 = vmul.f32 -1.442695, %v1778_v7 }
 0x6d8   : > { %v2293_v36 = vpop.eup %2292 }
 0x6d9   : > { %v1826_v21 = vmul.f32 %v2293_v36, %v1793_v20  ;;  %2294 = vpow2.f32 %v2075_v35  ;;  %vm1831_vm8 = vweird.f32 %v2293_v36 }
 0x6da   : > { %vm1832_vm10 = vmor %vm1830_vm9, %vm1831_vm8 }
 0x6db   : > { %v1827_v11 = vsub.f32 1.0, %v1826_v21 }
 0x6dd   : > { %v1828_v43 = vmul.f32 %v2293_v36, %v1827_v11  ;;  %v1905_v19 = vpop.f32.mrf.mxu1 }
 0x6de   : > { %v1906_v59 = vadd.f32 %v1905_v19, %v1879_v12 }
 0x6df   : > { %v2295_v37 = vpop.eup %2294  ;;  %v1829_v62 = vadd.f32 %v2293_v36, %v1828_v43 }
 0x6e0   : > { %v1794_v22 = vadd.f32 1.0, %v2295_v37  ;;  %v2078_v27 = vmul.f32 -1.442695, %v1906_v59 }
 0x6e1   : > { %v1833_v55 = vsel %vm1832_vm10, %v2293_v36, %v1829_v62 }
 0x6e2   : > { %v1838_v5 = vsel %vm1835_vm11, %v1837_v58, %v1833_v55  ;;  %2296 = vrcp.f32 %v1794_v22  ;;  %v1851_v28 = vand.u32 2147483648, %v1794_v22  ;;  %v1849_v14 = vand.u32 2147483647, %v1794_v22 }
 0x6e3   : > { %1857 = vst.msk [vmem:[%s2831_s25 + $0x20] sm:$0xff] %vm349_vm2, %v1838_v5  ;;  %2298 = vpow2.f32 %v2078_v27  ;;  %vm1845_vm13 = vweird.f32 %v1794_v22 }
 0x6e4   : > { %v1852_v56 = vor.u32 1.1754944e-38, %v1851_v28  ;;  %vm1850_vm0 = vcmp.eq.f32.partialorder %v1849_v14, 8.507059e+37 }
 0x6e8   : > { %v2297_v23 = vpop.eup %2296 }
 0x6e9   : > { %v2299_v34 = vpop.eup %2298  ;;  %v1841_v29 = vmul.f32 %v2297_v23, %v1794_v22  ;;  %vm1846_vm12 = vweird.f32 %v2297_v23 }
 0x6ea   : > { %v1911_v25 = vadd.f32 1.0, %v2299_v34  ;;  %vm1847_vm14 = vmor %vm1845_vm13, %vm1846_vm12 }
 0x6eb   : > { %v1842_v4 = vsub.f32 1.0, %v1841_v29 }
 0x6ec   : > { %2300 = vrcp.f32 %v1911_v25  ;;  %v1923_v38 = vand.u32 2147483648, %v1911_v25  ;;  %v1921_v41 = vand.u32 2147483647, %v1911_v25  ;;  %vm1917_vm15 = vweird.f32 %v1911_v25 }
 0x6ed   : > { %v1843_v30 = vmul.f32 %v2297_v23, %v1842_v4 }
 0x6ee   : > { %v1924_v3 = vor.u32 1.1754944e-38, %v1923_v38  ;;  %vm1922_vm4 = vcmp.eq.f32.partialorder %v1921_v41, 8.507059e+37 }
 0x6ef   : > { %v1844_v32 = vadd.f32 %v2297_v23, %v1843_v30 }
 0x6f1   : > { %v1848_v33 = vsel %vm1847_vm14, %v2297_v23, %v1844_v32 }
 0x6f2   : > { %v2301_v40 = vpop.eup %2300  ;;  %v1853_v44 = vsel %vm1850_vm0, %v1852_v56, %v1848_v33 }
 0x6f3   : > { %1858 = vst.msk [vmem:[%s2831_s25 + $0x28] sm:$0xff] %vm349_vm2, %v1853_v44  ;;  %v1913_v53 = vmul.f32 %v2301_v40, %v1911_v25  ;;  %vm1918_vm1 = vweird.f32 %v2301_v40 }
 0x6f4   : > { %vm1919_vm3 = vmor %vm1917_vm15, %vm1918_vm1 }
 0x6f5   : > { %v1914_v13 = vsub.f32 1.0, %v1913_v53 }
 0x6f7   : > { %v1915_v0 = vmul.f32 %v2301_v40, %v1914_v13 }
 0x6f9   : > { %v1916_v51 = vadd.f32 %v2301_v40, %v1915_v0 }
 0x6fb   : > { %v1920_v39 = vsel %vm1919_vm3, %v2301_v40, %v1916_v51 }
 0x6fc   : > { %v1925_v17 = vsel %vm1922_vm4, %v1924_v3, %v1920_v39 }
 0x6fd   : > { %1927 = vst.msk [vmem:[%s2831_s25 + $0x30] sm:$0xff] %vm349_vm2, %v1925_v17 }
 0x6fe PF: > { %s16_s21 = sadd.s32 1, %s2308_s21  }
 0x6ff   : > { %p13_p4 = scmp.ge.s32.totalorder %s16_s21, 6  }
 0x701   :  { %15 = sbr.rel (!%p13_p4) target bundleno = 1 (0x1), region = 80 }

</bundles_post_ra>
